<compile_context>
chip_gen: v7x
topology: tpu7x:2x2x1
jax: 0.10.0
libtpu: 0.0.40
codegen_flags: <defaults>
</compile_context>

<pallas_src>
import jax
import jax.numpy as jnp
from jax.experimental import pallas as pl
from jax.experimental.pallas import tpu as pltpu

D_IN, D_H1, D_H2 = 2048, 256, 64
NUM_CLASSES = 2
LANE = 128


def simplenet_kernel(x_ref, w1_ref, b1_ref, w2_ref, b2_ref, w3_ref, b3_ref, o_ref):
    # f32 -> bf16 cast on the VPU, hidden under the x DMA / fc1 MXU stream.
    x = x_ref[...].astype(jnp.bfloat16)                                # (TB, 2048)

    # fc1 + ReLU (MXU, f32 accumulate)
    h1 = jnp.dot(x, w1_ref[...], preferred_element_type=jnp.float32) + b1_ref[...]
    h1 = jnp.maximum(h1, 0.0).astype(jnp.bfloat16)                     # (TB, 256)

    # fc2 + ReLU (output padded 64 -> 128 with zero columns; stays zero through ReLU)
    h2 = jnp.dot(h1, w2_ref[...], preferred_element_type=jnp.float32) + b2_ref[...]
    h2 = jnp.maximum(h2, 0.0).astype(jnp.bfloat16)                     # (TB, 128)

    # fc3 (output padded 2 -> 128); padded rows/cols of w3 are zero.
    logits = jnp.dot(h2, w3_ref[...], preferred_element_type=jnp.float32) + b3_ref[...]

    # Softmax over the first NUM_CLASSES lanes; padded lanes masked with a literal.
    col = jax.lax.broadcasted_iota(jnp.int32, logits.shape, dimension=1)
    logits = jnp.where(col < NUM_CLASSES, logits, -1e30)
    m = jnp.max(logits, axis=-1, keepdims=True)
    e = jnp.exp(logits - m)
    denom = jnp.sum(e, axis=-1, keepdims=True)
    # Exact reciprocal: EUP is idle under the HBM/MXU-bound step, so this is free.
    o_ref[...] = (e * pl.reciprocal(denom, approx=False)).astype(o_ref.dtype)


def _pad_cols(a, n):
    pad = n - a.shape[-1]
    return jnp.pad(a, ((0, 0), (0, pad))) if pad > 0 else a


def simplenet_forward(x, params):
    """x: any shape with trailing elements totalling 2048 per sample (NCHW ok).
    params: (w1, b1, w2, b2, w3, b3) with w stored as (in_features, out_features)."""
    w1, b1, w2, b2, w3, b3 = params
    x2d = x.reshape(-1, D_IN).astype(jnp.float32)   # no-op cast if already f32
    B = x2d.shape[0]

    # Pad the batch only to a sublane multiple of 8 (never to a TB multiple).
    B_pad = max(8, -(-B // 8) * 8)
    if B_pad != B:
        x2d = jnp.pad(x2d, ((0, B_pad - B), (0, 0)))

    # Batch tile: >= 2 grid steps when possible (feeds both v7x TensorCores), capped at
    # 512 (near HBM roofline; ~12 MiB peak VMEM incl. double-buffered f32 x tiles).
    TB = min(512, max(8, -(-(B_pad // 2) // 8) * 8))
    grid = pl.cdiv(B_pad, TB)

    # bf16 matmul weights (tiny, VMEM-resident); biases stay f32. Tail layers padded to
    # lane width 128 with zeros (exact no-ops through ReLU / masked softmax).
    w1b = w1.astype(jnp.bfloat16)                                           # (2048, 256)
    b1f = b1.astype(jnp.float32)                                            # (1, 256)
    w2b = _pad_cols(w2, LANE).astype(jnp.bfloat16)                          # (256, 128)
    b2f = _pad_cols(b2, LANE).astype(jnp.float32)                           # (1, 128)
    w3b = jnp.pad(w3, ((0, LANE - D_H2), (0, LANE - NUM_CLASSES))).astype(jnp.bfloat16)  # (128, 128)
    b3f = _pad_cols(b3, LANE).astype(jnp.float32)                           # (1, 128)

    flops = 2 * B_pad * (D_IN * D_H1 + D_H1 * LANE + LANE * LANE)
    bytes_accessed = (
        B_pad * D_IN * 4                                      # streamed f32 x
        + (D_IN * D_H1 + D_H1 * LANE + LANE * LANE) * 2       # bf16 weights
        + (D_H1 + LANE + LANE) * 4                            # f32 biases
        + B_pad * LANE * 2                                    # bf16 output tile
    )
    transcendentals = B_pad * LANE

    const = lambda shape: pl.BlockSpec(shape, lambda i: (0, 0))
    out = pl.pallas_call(
        simplenet_kernel,
        out_shape=jax.ShapeDtypeStruct((B_pad, LANE), jnp.bfloat16),
        grid=(grid,),
        in_specs=[
            pl.BlockSpec((TB, D_IN), lambda i: (i, 0)),   # streamed, double-buffered
            const((D_IN, D_H1)), const((1, D_H1)),        # VMEM-resident weights/biases
            const((D_H1, LANE)), const((1, LANE)),
            const((LANE, LANE)), const((1, LANE)),
        ],
        out_specs=pl.BlockSpec((TB, LANE), lambda i: (i, 0)),   # lane-dense bf16 tile
        compiler_params=pltpu.CompilerParams(
            dimension_semantics=("parallel",),
            vmem_limit_bytes=64 << 20,
        ),
        cost_estimate=pl.CostEstimate(
            flops=flops,
            transcendentals=transcendentals,
            bytes_accessed=bytes_accessed,
        ),
    )(x2d, w1b, b1f, w2b, b2f, w3b, b3f)
    return out[:B, :NUM_CLASSES].astype(jnp.float32)


def reference_forward(x, params):
    """Pure-JAX f32 reference matching the PyTorch module."""
    w1, b1, w2, b2, w3, b3 = params
    h = x.reshape(-1, D_IN).astype(jnp.float32)
    h = jnp.maximum(h @ w1 + b1, 0.0)
    h = jnp.maximum(h @ w2 + b2, 0.0)
    return jax.nn.softmax(h @ w3 + b3, axis=-1)


def init_params(key):
    """Deterministic init matching PyTorch nn.Linear shapes (stored transposed: (in, out))."""
    ks = jax.random.split(key, 6)

    def linear(kw, kb, fan_in, fan_out):
        bound = 1.0 / jnp.sqrt(fan_in)
        w = jax.random.uniform(kw, (fan_in, fan_out), jnp.float32, -bound, bound)
        b = jax.random.uniform(kb, (1, fan_out), jnp.float32, -bound, bound)
        return w, b

    w1, b1 = linear(ks[0], ks[1], D_IN, D_H1)
    w2, b2 = linear(ks[2], ks[3], D_H1, D_H2)
    w3, b3 = linear(ks[4], ks[5], D_H2, NUM_CLASSES)
    return (w1, b1, w2, b2, w3, b3)


if __name__ == "__main__":
    key = jax.random.PRNGKey(0)
    k_in, k_p = jax.random.split(key)

    # NCHW input with 2*32*32 = 2048 features per sample -> view(-1, 2048) gives batch 4.
    x = jax.random.normal(k_in, (4, 2, 32, 32), dtype=jnp.float32)
    params = init_params(k_p)

    out = simplenet_forward(x, params)
    out = jax.block_until_ready(out)

    ref = reference_forward(x, params)
    assert out.shape == (4, NUM_CLASSES)
    # Loose tolerances: bf16 matmul operands + bf16 output writeback.
    assert bool(jnp.allclose(jnp.sum(out, axis=1), 1.0, atol=1e-2))
    assert bool(jnp.allclose(out, ref, atol=3e-2))
    print("KERNEL_OK")
</pallas_src>

<mosaic_0001>
module attributes {stable_mosaic.version = 11 : i64} {
  func.func @simplenet_kernel(%arg0: i32, %arg1: memref<8x2048xf32, #tpu.memory_space<vmem>>, %arg2: memref<2048x256xbf16, #tpu.memory_space<vmem>>, %arg3: memref<1x256xf32, #tpu.memory_space<vmem>>, %arg4: memref<256x128xbf16, #tpu.memory_space<vmem>>, %arg5: memref<1x128xf32, #tpu.memory_space<vmem>>, %arg6: memref<128x128xbf16, #tpu.memory_space<vmem>>, %arg7: memref<1x128xf32, #tpu.memory_space<vmem>>, %arg8: memref<8x128xbf16, #tpu.memory_space<vmem>>) attributes {dimension_semantics = [#tpu.dimension_semantics<parallel>], iteration_bounds = array<i64: 1>, scalar_prefetch = 0 : i64, scratch_operands = 0 : i64, tpu.core_type = #tpu.core_type<tc>, window_params = [{transform_indices = @transform_0, window_bounds = array<i64: 8, 2048>}, {pipeline_mode = #tpu.pipeline_mode<synchronous>, transform_indices = @transform_1, window_bounds = array<i64: 2048, 256>}, {pipeline_mode = #tpu.pipeline_mode<synchronous>, transform_indices = @transform_2, window_bounds = array<i64: 1, 256>}, {pipeline_mode = #tpu.pipeline_mode<synchronous>, transform_indices = @transform_3, window_bounds = array<i64: 256, 128>}, {pipeline_mode = #tpu.pipeline_mode<synchronous>, transform_indices = @transform_4, window_bounds = array<i64: 1, 128>}, {pipeline_mode = #tpu.pipeline_mode<synchronous>, transform_indices = @transform_5, window_bounds = array<i64: 128, 128>}, {pipeline_mode = #tpu.pipeline_mode<synchronous>, transform_indices = @transform_6, window_bounds = array<i64: 1, 128>}, {transform_indices = @transform_7, window_bounds = array<i64: 8, 128>}]} {
    %c0 = arith.constant 0 : index
    %c0_0 = arith.constant 0 : index
    %0 = vector.load %arg1[%c0, %c0_0] : memref<8x2048xf32, #tpu.memory_space<vmem>>, vector<8x2048xf32>
    %1 = arith.truncf %0 : vector<8x2048xf32> to vector<8x2048xbf16>
    %c0_1 = arith.constant 0 : index
    %c0_2 = arith.constant 0 : index
    %2 = vector.load %arg2[%c0_1, %c0_2] : memref<2048x256xbf16, #tpu.memory_space<vmem>>, vector<2048x256xbf16>
    %cst = arith.constant dense<0.000000e+00> : vector<8x256xf32>
    %3 = tpu.matmul %1, %2, %cst {dimension_numbers = #tpu.dot_dimension_numbers<[1], [0], [0], [1], [0, 0, 1, 1], [], []>} : vector<8x2048xbf16>, vector<2048x256xbf16>, vector<8x256xf32> -> vector<8x256xf32>
    %c0_3 = arith.constant 0 : index
    %c0_4 = arith.constant 0 : index
    %4 = vector.load %arg3[%c0_3, %c0_4] : memref<1x256xf32, #tpu.memory_space<vmem>>, vector<1x256xf32>
    %5 = vector.broadcast %4 : vector<1x256xf32> to vector<8x256xf32>
    %6 = arith.addf %3, %5 : vector<8x256xf32>
    %cst_5 = arith.constant 0.000000e+00 : f32
    %7 = vector.broadcast %cst_5 : f32 to vector<8x256xf32>
    %8 = arith.maximumf %6, %7 : vector<8x256xf32>
    %9 = arith.truncf %8 : vector<8x256xf32> to vector<8x256xbf16>
    %c0_6 = arith.constant 0 : index
    %c0_7 = arith.constant 0 : index
    %10 = vector.load %arg4[%c0_6, %c0_7] : memref<256x128xbf16, #tpu.memory_space<vmem>>, vector<256x128xbf16>
    %cst_8 = arith.constant dense<0.000000e+00> : vector<8x128xf32>
    %11 = tpu.matmul %9, %10, %cst_8 {dimension_numbers = #tpu.dot_dimension_numbers<[1], [0], [0], [1], [0, 0, 1, 1], [], []>} : vector<8x256xbf16>, vector<256x128xbf16>, vector<8x128xf32> -> vector<8x128xf32>
    %c0_9 = arith.constant 0 : index
    %c0_10 = arith.constant 0 : index
    %12 = vector.load %arg5[%c0_9, %c0_10] : memref<1x128xf32, #tpu.memory_space<vmem>>, vector<1x128xf32>
    %13 = vector.broadcast %12 : vector<1x128xf32> to vector<8x128xf32>
    %14 = arith.addf %11, %13 : vector<8x128xf32>
    %cst_11 = arith.constant 0.000000e+00 : f32
    %15 = vector.broadcast %cst_11 : f32 to vector<8x128xf32>
    %16 = arith.maximumf %14, %15 : vector<8x128xf32>
    %17 = arith.truncf %16 : vector<8x128xf32> to vector<8x128xbf16>
    %c0_12 = arith.constant 0 : index
    %c0_13 = arith.constant 0 : index
    %18 = vector.load %arg6[%c0_12, %c0_13] : memref<128x128xbf16, #tpu.memory_space<vmem>>, vector<128x128xbf16>
    %cst_14 = arith.constant dense<0.000000e+00> : vector<8x128xf32>
    %19 = tpu.matmul %17, %18, %cst_14 {dimension_numbers = #tpu.dot_dimension_numbers<[1], [0], [0], [1], [0, 0, 1, 1], [], []>} : vector<8x128xbf16>, vector<128x128xbf16>, vector<8x128xf32> -> vector<8x128xf32>
    %c0_15 = arith.constant 0 : index
    %c0_16 = arith.constant 0 : index
    %20 = vector.load %arg7[%c0_15, %c0_16] : memref<1x128xf32, #tpu.memory_space<vmem>>, vector<1x128xf32>
    %21 = vector.broadcast %20 : vector<1x128xf32> to vector<8x128xf32>
    %22 = arith.addf %19, %21 : vector<8x128xf32>
    %23 = tpu.iota {dimensions = array<i32: 1>} : vector<8x128xi32>
    %c2_i32 = arith.constant 2 : i32
    %24 = vector.broadcast %c2_i32 : i32 to vector<8x128xi32>
    %25 = arith.cmpi slt, %23, %24 : vector<8x128xi32>
    %cst_17 = arith.constant -1.000000e+30 : f32
    %26 = vector.broadcast %cst_17 : f32 to vector<8x128xf32>
    %27 = arith.select %25, %22, %26 : vector<8x128xi1>, vector<8x128xf32>
    %cst_18 = arith.constant dense<0xFF800000> : vector<8xf32>
    %28 = vector.multi_reduction <maximumf>, %27, %cst_18 [1] : vector<8x128xf32> to vector<8xf32>
    %29 = vector.shape_cast %28 : vector<8xf32> to vector<8x1xf32>
    %30 = vector.broadcast %29 : vector<8x1xf32> to vector<8x128xf32>
    %31 = arith.subf %27, %30 : vector<8x128xf32>
    %32 = math.exp %31 : vector<8x128xf32>
    %cst_19 = arith.constant dense<0.000000e+00> : vector<8xf32>
    %33 = vector.multi_reduction <add>, %32, %cst_19 [1] : vector<8x128xf32> to vector<8xf32>
    %34 = vector.shape_cast %33 : vector<8xf32> to vector<8x1xf32>
    %35 = tpu.reciprocal %34 : vector<8x1xf32> -> vector<8x1xf32>
    %36 = vector.broadcast %35 : vector<8x1xf32> to vector<8x128xf32>
    %37 = arith.mulf %32, %36 : vector<8x128xf32>
    %38 = arith.truncf %37 : vector<8x128xf32> to vector<8x128xbf16>
    %c0_20 = arith.constant 0 : index
    %c0_21 = arith.constant 0 : index
    %39 = vector.load %arg8[%c0_20, %c0_21] : memref<8x128xbf16, #tpu.memory_space<vmem>>, vector<8x128xbf16>
    tpu.vector_store %arg8[%c0_20, %c0_21], %38 {strides = array<i32>} : memref<8x128xbf16, #tpu.memory_space<vmem>>, vector<8x128xbf16>,
    return
  }
  func.func @transform_0(%arg0: i32) -> (i32, i32) {
    %c0_i32 = arith.constant 0 : i32
    %c0_i32_0 = arith.constant 0 : i32
    return %arg0, %c0_i32 : i32, i32
  }
  func.func @transform_1(%arg0: i32) -> (i32, i32) {
    %c0_i32 = arith.constant 0 : i32
    %c0_i32_0 = arith.constant 0 : i32
    %c0_i32_1 = arith.constant 0 : i32
    return %c0_i32, %c0_i32_0 : i32, i32
  }
  func.func @transform_2(%arg0: i32) -> (i32, i32) {
    %c0_i32 = arith.constant 0 : i32
    %c0_i32_0 = arith.constant 0 : i32
    %c0_i32_1 = arith.constant 0 : i32
    return %c0_i32, %c0_i32_0 : i32, i32
  }
  func.func @transform_3(%arg0: i32) -> (i32, i32) {
    %c0_i32 = arith.constant 0 : i32
    %c0_i32_0 = arith.constant 0 : i32
    %c0_i32_1 = arith.constant 0 : i32
    return %c0_i32, %c0_i32_0 : i32, i32
  }
  func.func @transform_4(%arg0: i32) -> (i32, i32) {
    %c0_i32 = arith.constant 0 : i32
    %c0_i32_0 = arith.constant 0 : i32
    %c0_i32_1 = arith.constant 0 : i32
    return %c0_i32, %c0_i32_0 : i32, i32
  }
  func.func @transform_5(%arg0: i32) -> (i32, i32) {
    %c0_i32 = arith.constant 0 : i32
    %c0_i32_0 = arith.constant 0 : i32
    %c0_i32_1 = arith.constant 0 : i32
    return %c0_i32, %c0_i32_0 : i32, i32
  }
  func.func @transform_6(%arg0: i32) -> (i32, i32) {
    %c0_i32 = arith.constant 0 : i32
    %c0_i32_0 = arith.constant 0 : i32
    %c0_i32_1 = arith.constant 0 : i32
    return %c0_i32, %c0_i32_0 : i32, i32
  }
  func.func @transform_7(%arg0: i32) -> (i32, i32) {
    %c0_i32 = arith.constant 0 : i32
    %c0_i32_0 = arith.constant 0 : i32
    return %arg0, %c0_i32 : i32, i32
  }
}

</mosaic_0001>

<bundles_post_ra>
// kernel: tpu_custom_call.1
= control target key start
LH: loop header
LB: loop body
LE: loop exit
PB: predicated region body
PF: predicated region fallthrough
CT: control target
= control target key end

     0   :  { %12 = vsyncpa [#allocation3], 0  ;;  %s3471_s0 = inlined_call_operand.hbm [shape: f32[8,2048], index: 0, kind: input, shape index: {}]   ;;  %s3472_s1 = inlined_call_operand.hbm [shape: bf16[2048,256], index: 1, kind: input, shape index: {}]   ;;  %s3473_s2 = inlined_call_operand.hbm [shape: f32[1,256], index: 2, kind: input, shape index: {}]   ;;  %s3474_s3 = inlined_call_operand.hbm [shape: bf16[256,128], index: 3, kind: input, shape index: {}]   ;;  %s3475_s4 = inlined_call_operand.hbm [shape: f32[1,128], index: 4, kind: input, shape index: {}]   ;;  %s3476_s5 = inlined_call_operand.hbm [shape: bf16[128,128], index: 5, kind: input, shape index: {}]   ;;  %s3477_s6 = inlined_call_operand.hbm [shape: f32[1,128], index: 6, kind: input, shape index: {}]   ;;  %s3478_s7 = inlined_call_operand.hbm [shape: bf16[8,128], index: 7, kind: output, shape index: {}]  }
   0x1   :  { %13 = vsyncpa [#allocation6], 0 }
   0x2   :  { %14 = vsyncpa [#allocation9], 0 }
   0x3   :  { %15 = vsyncpa [#allocation12], 0 }
   0x4   :  { %16 = vsyncpa [#allocation4], 0  ;;  %s3321_s24 = smov [#allocation5]   ;;  %s3135_s28 = scalar_lea.hbm %s3472_s1, 32768 }
   0x5   :  { %s32_s25 = sshll.u32 %s3321_s24, 4  ;;  %p3136_p0 = scmp.ne.s32.totalorder %s3472_s1, %s3135_s28  ;;  %s33_s25 = int_to_ptr.vmem [resolvable:$true] %s32_s25 }
   0x6   :  { %p3139_p1 = scmp.lt.u32.totalorder %s3135_s28, %s3472_s1 }
   0x8   :  { %p3141_p2 = pnand %p3139_p1, %p3136_p0 }
   0xa   :  { %3144 = shalt.err (!%p3141_p2)
}
   0xb   :  { %s3145_s10 = scalar_lea.vmem %s33_s25, 32768  ;;  %p3150_p4 = scmp.lt.s32.totalorder %s33_s25, %s33_s25 }
   0xc   :  { %p3146_p3 = scmp.ne.s32.totalorder %s33_s25, %s3145_s10  ;;  %p3151_p5 = scmp.lt.s32.totalorder %s3145_s10, %s3145_s10 }
   0xe   :  { %p3152_p6 = por %p3151_p5, %p3150_p4 }
  0x10   :  { %p3153_p7 = pnand %p3152_p6, %p3146_p3 }
  0x12   :  { %3156 = shalt.err (!%p3153_p7)
}
  0x13   :  { %s3322_s11 = smov 128   ;;  %s3323_s12 = smov 8  }
  0x14   :  { %38 = dma.hbm_to_vmem [thread:$0]  %s3472_s1, 32768, %s33_s25, [#allocation6], %s3322_s11, %s3322_s11, %s3323_s12  }
  0x15   :  { %s3324_s15 = smov [#allocation8]   ;;  %s3157_s19 = scalar_lea.hbm %s3474_s3, 2048 }
  0x16   :  { %s54_s16 = sshll.u32 %s3324_s15, 4  ;;  %p3158_p8 = scmp.ne.s32.totalorder %s3474_s3, %s3157_s19  ;;  %s55_s16 = int_to_ptr.vmem [resolvable:$true] %s54_s16 }
  0x17   :  { %p3161_p9 = scmp.lt.u32.totalorder %s3157_s19, %s3474_s3 }
  0x19   :  { %p3163_p10 = pnand %p3161_p9, %p3158_p8 }
  0x1b   :  { %3166 = shalt.err (!%p3163_p10)
}
  0x1c   :  { %s3167_s24 = scalar_lea.vmem %s55_s16, 2048  ;;  %p3172_p12 = scmp.lt.s32.totalorder %s55_s16, %s55_s16 }
  0x1d   :  { %p3168_p11 = scmp.ne.s32.totalorder %s55_s16, %s3167_s24  ;;  %p3173_p13 = scmp.lt.s32.totalorder %s3167_s24, %s3167_s24 }
  0x1f   :  { %p3174_p0 = por %p3173_p13, %p3172_p12 }
  0x21   :  { %p3175_p1 = pnand %p3174_p0, %p3168_p11 }
  0x23   :  { %3178 = shalt.err (!%p3175_p1)
}
  0x24   :  { %s3325_s1 = smov 64   ;;  %s3326_s25 = smov 4  }
  0x25   :  { %60 = dma.hbm_to_vmem [thread:$0]  %s3474_s3, 2048, %s55_s16, [#allocation9], %s3325_s1, %s3325_s1, %s3326_s25  }
  0x26   :  { %s3327_s28 = smov [#allocation11]   ;;  %s3328_s30 = smov [#allocation2]  }
  0x27   :  { %s76_s29 = sshll.u32 %s3327_s28, 4  ;;  %s23_s8 = sshll.u32 %s3328_s30, 4  ;;  %s77_s29 = int_to_ptr.vmem [resolvable:$true] %s76_s29  ;;  %s24_s8 = int_to_ptr.vmem [resolvable:$true] %s23_s8 }
  0x28   :  { %s3179_s11 = scalar_lea.hbm %s3476_s5, 1024 }
  0x29   :  { %p3180_p2 = scmp.ne.s32.totalorder %s3476_s5, %s3179_s11  ;;  %p3183_p3 = scmp.lt.u32.totalorder %s3179_s11, %s3476_s5 }
  0x2b   :  { %p3185_p4 = pnand %p3183_p3, %p3180_p2 }
  0x2d   :  { %3188 = shalt.err (!%p3185_p4)
}
  0x2e   :  { %s3189_s3 = scalar_lea.vmem %s77_s29, 1024  ;;  %p3194_p6 = scmp.lt.s32.totalorder %s77_s29, %s77_s29 }
  0x2f   :  { %p3190_p5 = scmp.ne.s32.totalorder %s77_s29, %s3189_s3  ;;  %p3195_p7 = scmp.lt.s32.totalorder %s3189_s3, %s3189_s3 }
  0x31   :  { %p3196_p8 = por %p3195_p7, %p3194_p6 }
  0x33   :  { %p3197_p9 = pnand %p3196_p8, %p3190_p5 }
  0x35   :  { %3200 = shalt.err (!%p3197_p9)
}
  0x36   :  { %82 = dma.hbm_to_vmem [thread:$0]  %s3476_s5, 1024, %s77_s29, [#allocation12], %s3325_s1, %s3325_s1, %s3326_s25  }
  0x37   :  { %s3201_s20 = scalar_lea.hbm %s3471_s0, 2048 }
  0x38   :  { %p3202_p10 = scmp.ne.s32.totalorder %s3471_s0, %s3201_s20  ;;  %p3205_p11 = scmp.lt.u32.totalorder %s3201_s20, %s3471_s0 }
  0x3a   :  { %p3207_p12 = pnand %p3205_p11, %p3202_p10 }
  0x3c   :  { %3210 = shalt.err (!%p3207_p12)
}
  0x3d   :  { %s3211_s26 = scalar_lea.vmem %s24_s8, 2048  ;;  %p3216_p0 = scmp.lt.s32.totalorder %s24_s8, %s24_s8 }
  0x3e   :  { %p3212_p13 = scmp.ne.s32.totalorder %s24_s8, %s3211_s26  ;;  %p3217_p1 = scmp.lt.s32.totalorder %s3211_s26, %s3211_s26 }
  0x40   :  { %p3218_p2 = por %p3217_p1, %p3216_p0 }
  0x42   :  { %p3219_p3 = pnand %p3218_p2, %p3212_p13 }
  0x44   :  { %3222 = shalt.err (!%p3219_p3)
}
  0x45   :  { %26 = dma.hbm_to_vmem [thread:$0]  %s3471_s0, 2048, %s24_s8, [#allocation3]  }
  0x46   :  { %s3329_s25 = smov [#allocation7]   ;;  %s3330_s28 = smov [#allocation10]  }
  0x47   :  { %s45_s27 = sshll.u32 %s3329_s25, 4  ;;  %s67_s29 = sshll.u32 %s3330_s28, 4  ;;  %s46_s27 = int_to_ptr.vmem [resolvable:$true] %s45_s27  ;;  %s68_s29 = int_to_ptr.vmem [resolvable:$true] %s67_s29 }
  0x48   :  { %s3223_s10 = scalar_lea.hbm %s3473_s2, 32 }
  0x49   :  { %p3224_p4 = scmp.ne.s32.totalorder %s3473_s2, %s3223_s10  ;;  %p3227_p5 = scmp.lt.u32.totalorder %s3223_s10, %s3473_s2 }
  0x4b   :  { %p3229_p6 = pnand %p3227_p5, %p3224_p4 }
  0x4d   :  { %3232 = shalt.err (!%p3229_p6)
}
  0x4e   :  { %s3233_s0 = scalar_lea.vmem %s46_s27, 32  ;;  %p3238_p8 = scmp.lt.s32.totalorder %s46_s27, %s46_s27 }
  0x4f   :  { %p3234_p7 = scmp.ne.s32.totalorder %s46_s27, %s3233_s0  ;;  %p3239_p9 = scmp.lt.s32.totalorder %s3233_s0, %s3233_s0 }
  0x51   :  { %p3240_p10 = por %p3239_p9, %p3238_p8 }
  0x53   :  { %p3241_p11 = pnand %p3240_p10, %p3234_p7 }
  0x55   :  { %3244 = shalt.err (!%p3241_p11)
}
  0x56   :  { %48 = dma.hbm_to_vmem [thread:$0]  %s3473_s2, 32, %s46_s27, [#allocation6]  }
  0x57   :  { %s3245_s17 = scalar_lea.hbm %s3475_s4, 16 }
  0x58   :  { %p3246_p12 = scmp.ne.s32.totalorder %s3475_s4, %s3245_s17  ;;  %p3249_p13 = scmp.lt.u32.totalorder %s3245_s17, %s3475_s4 }
  0x5a   :  { %p3251_p0 = pnand %p3249_p13, %p3246_p12 }
  0x5c   :  { %3254 = shalt.err (!%p3251_p0)
}
  0x5d   :  { %s3255_s22 = scalar_lea.vmem %s68_s29, 16  ;;  %s3259_s23 = scalar_lea.vmem %s68_s29, 32 }
  0x5e   :  { %p3256_p1 = scmp.ne.s32.totalorder %s68_s29, %s3255_s22  ;;  %p3260_p2 = scmp.lt.s32.totalorder %s68_s29, %s68_s29 }
  0x5f   :  { %p3261_p3 = scmp.lt.s32.totalorder %s3259_s23, %s3255_s22 }
  0x61   :  { %p3262_p4 = por %p3261_p3, %p3260_p2 }
  0x63   :  { %p3263_p5 = pnand %p3262_p4, %p3256_p1 }
  0x65   :  { %3266 = shalt.err (!%p3263_p5)
}
  0x66   :  { %70 = dma.hbm_to_vmem [thread:$0]  %s3475_s4, 16, %s68_s29, [#allocation9]  }
  0x67   :  { %s3331_s26 = smov [#allocation13]   ;;  %s3267_s27 = scalar_lea.hbm %s3477_s6, 16 }
  0x68   :  { %s89_s5 = sshll.u32 %s3331_s26, 4  ;;  %p3268_p6 = scmp.ne.s32.totalorder %s3477_s6, %s3267_s27  ;;  %s90_s5 = int_to_ptr.vmem [resolvable:$true] %s89_s5 }
  0x69   :  { %p3271_p7 = scmp.lt.u32.totalorder %s3267_s27, %s3477_s6 }
  0x6b   :  { %p3273_p8 = pnand %p3271_p7, %p3268_p6 }
  0x6d   :  { %3276 = shalt.err (!%p3273_p8)
}
  0x6e   :  { %s3277_s11 = scalar_lea.vmem %s90_s5, 16  ;;  %s3281_s4 = scalar_lea.vmem %s90_s5, 32 }
  0x6f   :  { %p3278_p9 = scmp.ne.s32.totalorder %s90_s5, %s3277_s11  ;;  %p3282_p10 = scmp.lt.s32.totalorder %s90_s5, %s90_s5 }
  0x70   :  { %p3283_p11 = scmp.lt.s32.totalorder %s3281_s4, %s3277_s11 }
  0x72   :  { %p3284_p12 = por %p3283_p11, %p3282_p10 }
  0x74   :  { %p3285_p13 = pnand %p3284_p12, %p3278_p9 }
  0x76   :  { %3288 = shalt.err (!%p3285_p13)
}
  0x77   :  { %92 = dma.hbm_to_vmem [thread:$0]  %s3477_s6, 16, %s90_s5, [#allocation12]  }
  0x78   :  { %3311 = dma.done.wait [#allocation3], 2048  }
  0x79   :  { %3312 = vsyncadd [#allocation3], 4294965248 }
  0x7a   :  { %3313 = dma.done.wait [#allocation6], 32800  }
  0x7b   :  { %3314 = vsyncadd [#allocation6], 4294934496 }
  0x7c   :  { %3315 = dma.done.wait [#allocation9], 2064  }
  0x7d   :  { %3316 = vsyncadd [#allocation9], 4294965232 }
  0x7e   :  { %3317 = dma.done.wait [#allocation12], 1040  }
  0x7f   :  { %3318 = vsyncadd [#allocation12], 4294966256  ;;  %v2723_v0 = vld [vmem:[#allocation5 + $0x4] ss:$8 sps:$4 sm:$0xff]   ;;  %v2727_v2 = vld [vmem:[#allocation5] ss:$8 sps:$4 sm:$0xff]  }
  0x80   :  { %v2725_v1 = vld [vmem:[#allocation5 + $0x304] ss:$8 sps:$4 sm:$0xff]   ;;  %1695 = vmatprep.subr.bf16.mxu1 %v2723_v0  ;;  %v2728_v3 = vld [vmem:[#allocation5 + $0x300] ss:$8 sps:$4 sm:$0xff]   ;;  %v2729_v4 = vld [vmem:[#allocation5 + $0x14] ss:$8 sps:$4 sm:$0xff]  }
  0x81   :  { %1818 = vmatprep.subr.bf16.mxu0 %v2725_v1  ;;  %1696 = vmatpush1.bf16.msra.mxu1 %v2727_v2  ;;  %v2731_v5 = vld [vmem:[#allocation5 + $0x314] ss:$8 sps:$4 sm:$0xff]   ;;  %v2733_v6 = vld [vmem:[#allocation5 + $0x10] ss:$8 sps:$4 sm:$0xff]   ;;  %v2735_v8 = vld [vmem:[#allocation5 + $0x24] ss:$8 sps:$4 sm:$0xff]  }
  0x82   :  { %1819 = vmatpush1.bf16.msra.mxu0 %v2728_v3  ;;  %1697 = vmatprep.subr.bf16.mxu1 %v2729_v4  ;;  %v2734_v7 = vld [vmem:[#allocation5 + $0x310] ss:$8 sps:$4 sm:$0xff]   ;;  %v2737_v9 = vld [vmem:[#allocation5 + $0x324] ss:$8 sps:$4 sm:$0xff]   ;;  %v2739_v10 = vld [vmem:[#allocation5 + $0x20] ss:$8 sps:$4 sm:$0xff]  }
  0x83   :  { %1820 = vmatprep.subr.bf16.mxu0 %v2731_v5  ;;  %v2740_v11 = vld [vmem:[#allocation5 + $0x320] ss:$8 sps:$4 sm:$0xff]   ;;  %v2741_v12 = vld [vmem:[#allocation5 + $0x34] ss:$8 sps:$4 sm:$0xff]   ;;  %v2745_v14 = vld [vmem:[#allocation5 + $0x30] ss:$8 sps:$4 sm:$0xff]  }
  0x84   :  { %v2743_v13 = vld [vmem:[#allocation5 + $0x334] ss:$8 sps:$4 sm:$0xff]   ;;  %v2746_v15 = vld [vmem:[#allocation5 + $0x330] ss:$8 sps:$4 sm:$0xff]   ;;  %v2747_v16 = vld [vmem:[#allocation5 + $0x44] ss:$8 sps:$4 sm:$0xff]  }
  0x85   :  { %1698 = vmatpush1.bf16.msra.mxu1 %v2733_v6  ;;  %v2749_v17 = vld [vmem:[#allocation5 + $0x344] ss:$8 sps:$4 sm:$0xff]   ;;  %v2751_v18 = vld [vmem:[#allocation5 + $0x40] ss:$8 sps:$4 sm:$0xff]   ;;  %v2753_v20 = vld [vmem:[#allocation5 + $0x54] ss:$8 sps:$4 sm:$0xff]  }
  0x86   :  { %1821 = vmatpush1.bf16.msra.mxu0 %v2734_v7  ;;  %1699 = vmatprep.subr.bf16.mxu1 %v2735_v8  ;;  %v2752_v19 = vld [vmem:[#allocation5 + $0x340] ss:$8 sps:$4 sm:$0xff]   ;;  %v2755_v21 = vld [vmem:[#allocation5 + $0x354] ss:$8 sps:$4 sm:$0xff]   ;;  %v2757_v22 = vld [vmem:[#allocation5 + $0x50] ss:$8 sps:$4 sm:$0xff]  }
  0x87   :  { %1822 = vmatprep.subr.bf16.mxu0 %v2737_v9  ;;  %v2758_v23 = vld [vmem:[#allocation5 + $0x350] ss:$8 sps:$4 sm:$0xff]   ;;  %v2759_v24 = vld [vmem:[#allocation5 + $0x64] ss:$8 sps:$4 sm:$0xff]   ;;  %v2763_v26 = vld [vmem:[#allocation5 + $0x60] ss:$8 sps:$4 sm:$0xff]  }
  0x88   :  { %v2761_v25 = vld [vmem:[#allocation5 + $0x364] ss:$8 sps:$4 sm:$0xff]   ;;  %v2764_v27 = vld [vmem:[#allocation5 + $0x360] ss:$8 sps:$4 sm:$0xff]   ;;  %v2765_v28 = vld [vmem:[#allocation5 + $0x74] ss:$8 sps:$4 sm:$0xff]  }
  0x89   :  { %1700 = vmatpush1.bf16.msra.mxu1 %v2739_v10  ;;  %v2767_v29 = vld [vmem:[#allocation5 + $0x374] ss:$8 sps:$4 sm:$0xff]   ;;  %v2769_v30 = vld [vmem:[#allocation5 + $0x70] ss:$8 sps:$4 sm:$0xff]   ;;  %v2771_v32 = vld [vmem:[#allocation5 + $0x84] ss:$8 sps:$4 sm:$0xff]  }
  0x8a   :  { %1823 = vmatpush1.bf16.msra.mxu0 %v2740_v11  ;;  %1701 = vmatprep.subr.bf16.mxu1 %v2741_v12  ;;  %v2770_v31 = vld [vmem:[#allocation5 + $0x370] ss:$8 sps:$4 sm:$0xff]   ;;  %v2773_v33 = vld [vmem:[#allocation5 + $0x384] ss:$8 sps:$4 sm:$0xff]   ;;  %v2775_v34 = vld [vmem:[#allocation5 + $0x80] ss:$8 sps:$4 sm:$0xff]  }
  0x8b   :  { %1824 = vmatprep.subr.bf16.mxu0 %v2743_v13  ;;  %v2776_v35 = vld [vmem:[#allocation5 + $0x380] ss:$8 sps:$4 sm:$0xff]   ;;  %v2777_v36 = vld [vmem:[#allocation5 + $0x94] ss:$8 sps:$4 sm:$0xff]   ;;  %v2781_v38 = vld [vmem:[#allocation5 + $0x90] ss:$8 sps:$4 sm:$0xff]  }
  0x8c   :  { %v2779_v37 = vld [vmem:[#allocation5 + $0x394] ss:$8 sps:$4 sm:$0xff]   ;;  %v2782_v39 = vld [vmem:[#allocation5 + $0x390] ss:$8 sps:$4 sm:$0xff]   ;;  %v2783_v40 = vld [vmem:[#allocation5 + $0xa4] ss:$8 sps:$4 sm:$0xff]  }
  0x8d   :  { %1702 = vmatpush1.bf16.msra.mxu1 %v2745_v14  ;;  %v2785_v41 = vld [vmem:[#allocation5 + $0x3a4] ss:$8 sps:$4 sm:$0xff]   ;;  %v2787_v42 = vld [vmem:[#allocation5 + $0xa0] ss:$8 sps:$4 sm:$0xff]   ;;  %v2789_v44 = vld [vmem:[#allocation5 + $0xb4] ss:$8 sps:$4 sm:$0xff]  }
  0x8e   :  { %1825 = vmatpush1.bf16.msra.mxu0 %v2746_v15  ;;  %1703 = vmatprep.subr.bf16.mxu1 %v2747_v16  ;;  %v2788_v43 = vld [vmem:[#allocation5 + $0x3a0] ss:$8 sps:$4 sm:$0xff]   ;;  %v2791_v45 = vld [vmem:[#allocation5 + $0x3b4] ss:$8 sps:$4 sm:$0xff]   ;;  %v2793_v47 = vld [vmem:[#allocation5 + $0xb0] ss:$8 sps:$4 sm:$0xff]  }
  0x8f   :  { %1826 = vmatprep.subr.bf16.mxu0 %v2749_v17  ;;  %v116_v46 = vld [vmem:[#allocation2 + $0x8] sm:$0xff]  ;;  %v2794_v49 = vld [vmem:[#allocation5 + $0x3b0] ss:$8 sps:$4 sm:$0xff]   ;;  %v2801_v56 = vld [vmem:[#allocation5 + $0xd4] ss:$8 sps:$4 sm:$0xff]   ;;  %vm3333_vm0 = vmmov 0  }
  0x90   :  { %v132_v48 = vpack.c.bf16 %v116_v46, %v116_v46  ;;  %v122_v50 = vld [vmem:[#allocation2 + $0x38] sm:$0xff]  ;;  %v2795_v51 = vld [vmem:[#allocation5 + $0xc4] ss:$8 sps:$4 sm:$0xff]   ;;  %v2799_v54 = vld [vmem:[#allocation5 + $0xc0] ss:$8 sps:$4 sm:$0xff]   ;;  %s3334_s6 = smov [#allocation14]  }
  0x91   :  { %1704 = vmatpush1.bf16.msra.mxu1 %v2751_v18  ;;  %v2797_v52 = vld [vmem:[#allocation5 + $0x3c4] ss:$8 sps:$4 sm:$0xff]   ;;  %v138_v53 = vpack.c.bf16 %v122_v50, %v122_v50  ;;  %v2800_v55 = vld [vmem:[#allocation5 + $0x3c0] ss:$8 sps:$4 sm:$0xff]   ;;  %v2803_v57 = vld [vmem:[#allocation5 + $0x3d4] ss:$8 sps:$4 sm:$0xff]  }
  0x92   :  { %1827 = vmatpush1.bf16.msra.mxu0 %v2752_v19  ;;  %1705 = vmatprep.subr.bf16.mxu1 %v2753_v20  ;;  %v2805_v58 = vld [vmem:[#allocation5 + $0xd0] ss:$8 sps:$4 sm:$0xff]   ;;  %v2807_v60 = vld [vmem:[#allocation5 + $0xe4] ss:$8 sps:$4 sm:$0xff]   ;;  %v2811_v62 = vld [vmem:[#allocation5 + $0xe0] ss:$8 sps:$4 sm:$0xff]  }
  0x93   :  { %1828 = vmatprep.subr.bf16.mxu0 %v2755_v21  ;;  %1727 = vmatprep.mubr.bf16.mxu1 %v132_v48  ;;  %v2806_v59 = vld [vmem:[#allocation5 + $0x3d0] ss:$8 sps:$4 sm:$0xff]   ;;  %v2809_v61 = vld [vmem:[#allocation5 + $0x3e4] ss:$8 sps:$4 sm:$0xff]   ;;  %v2812_v63 = vld [vmem:[#allocation5 + $0x3e0] ss:$8 sps:$4 sm:$0xff]  }
  0x94   :  { %1850 = vmatprep.mubr.bf16.mxu0 %v138_v53  ;;  %v2813_v0 = vld [vmem:[#allocation5 + $0xf4] ss:$8 sps:$4 sm:$0xff]   ;;  %v2817_v2 = vld [vmem:[#allocation5 + $0xf0] ss:$8 sps:$4 sm:$0xff]   ;;  %v2821_v4 = vld [vmem:[#allocation5 + $0x104] ss:$8 sps:$4 sm:$0xff]  }
  0x95   :  { %1706 = vmatpush1.bf16.msra.mxu1 %v2757_v22  ;;  %v2815_v1 = vld [vmem:[#allocation5 + $0x3f4] ss:$8 sps:$4 sm:$0xff]   ;;  %v2818_v3 = vld [vmem:[#allocation5 + $0x3f0] ss:$8 sps:$4 sm:$0xff]   ;;  %v115_v5 = vld [vmem:[#allocation2] sm:$0xff]  ;;  %s2336_s13 = sshll.u32 %s3334_s6, 4  ;;  %s2337_s13 = int_to_ptr.vmem [resolvable:$true] %s2336_s13 }
  0x96   :  { %1829 = vmatpush1.bf16.msra.mxu0 %v2758_v23  ;;  %1707 = vmatprep.subr.bf16.mxu1 %v2759_v24  ;;  %v121_v6 = vld [vmem:[#allocation2 + $0x30] sm:$0xff]  ;;  %v2824_v7 = vld [vmem:[#allocation5 + $0x404] ss:$8 sps:$4 sm:$0xff]   ;;  %v2819_v8 = vld [vmem:[#allocation5 + $0x100] ss:$8 sps:$4 sm:$0xff]   ;;  %v131_v10 = vpack.c.bf16 %v115_v5, %v115_v5  ;;  %s3289_s14 = scalar_lea.vmem %s2337_s13, 64  ;;  %p3294_p1 = scmp.lt.s32.totalorder %s2337_s13, %s2337_s13 }
  0x97   :  { %1830 = vmatprep.subr.bf16.mxu0 %v2761_v25  ;;  %v2822_v9 = vld [vmem:[#allocation5 + $0x400] ss:$8 sps:$4 sm:$0xff]   ;;  %v137_v11 = vpack.c.bf16 %v121_v6, %v121_v6  ;;  %v2827_v12 = vld [vmem:[#allocation5 + $0x114] ss:$8 sps:$4 sm:$0xff]   ;;  %v2825_v14 = vld [vmem:[#allocation5 + $0x110] ss:$8 sps:$4 sm:$0xff]   ;;  %p3290_p0 = scmp.ne.s32.totalorder %s2337_s13, %s3289_s14  ;;  %p3295_p2 = scmp.lt.s32.totalorder %s3289_s14, %s3289_s14 }
  0x98   :  { %v2830_v13 = vld [vmem:[#allocation5 + $0x414] ss:$8 sps:$4 sm:$0xff]   ;;  %v2828_v15 = vld [vmem:[#allocation5 + $0x410] ss:$8 sps:$4 sm:$0xff]   ;;  %v2833_v16 = vld [vmem:[#allocation5 + $0x124] ss:$8 sps:$4 sm:$0xff]  }
  0x99   :  { %1708 = vmatpush1.bf16.msra.mxu1 %v2763_v26  ;;  %v2836_v17 = vld [vmem:[#allocation5 + $0x424] ss:$8 sps:$4 sm:$0xff]   ;;  %v2831_v18 = vld [vmem:[#allocation5 + $0x120] ss:$8 sps:$4 sm:$0xff]   ;;  %v2839_v20 = vld [vmem:[#allocation5 + $0x134] ss:$8 sps:$4 sm:$0xff]   ;;  %p3296_p3 = por %p3295_p2, %p3294_p1 }
  0x9a   :  { %1831 = vmatpush1.bf16.msra.mxu0 %v2764_v27  ;;  %1709 = vmatprep.subr.bf16.mxu1 %v2765_v28  ;;  %v2834_v19 = vld [vmem:[#allocation5 + $0x420] ss:$8 sps:$4 sm:$0xff]   ;;  %v2842_v21 = vld [vmem:[#allocation5 + $0x434] ss:$8 sps:$4 sm:$0xff]   ;;  %v2837_v22 = vld [vmem:[#allocation5 + $0x130] ss:$8 sps:$4 sm:$0xff]  }
  0x9b   :  { %1832 = vmatprep.subr.bf16.mxu0 %v2767_v29  ;;  %v2840_v23 = vld [vmem:[#allocation5 + $0x430] ss:$8 sps:$4 sm:$0xff]   ;;  %v2845_v24 = vld [vmem:[#allocation5 + $0x144] ss:$8 sps:$4 sm:$0xff]   ;;  %v2843_v26 = vld [vmem:[#allocation5 + $0x140] ss:$8 sps:$4 sm:$0xff]   ;;  %p3297_p4 = pnand %p3296_p3, %p3290_p0 }
  0x9c   :  { %v2848_v25 = vld [vmem:[#allocation5 + $0x444] ss:$8 sps:$4 sm:$0xff]   ;;  %v2846_v27 = vld [vmem:[#allocation5 + $0x440] ss:$8 sps:$4 sm:$0xff]   ;;  %v2851_v28 = vld [vmem:[#allocation5 + $0x154] ss:$8 sps:$4 sm:$0xff]  }
  0x9d   :  { %1710 = vmatpush1.bf16.msra.mxu1 %v2769_v30  ;;  %v2854_v29 = vld [vmem:[#allocation5 + $0x454] ss:$8 sps:$4 sm:$0xff]   ;;  %v2849_v30 = vld [vmem:[#allocation5 + $0x150] ss:$8 sps:$4 sm:$0xff]   ;;  %v2867_v46 = vld [vmem:[#allocation5 + $0x180] ss:$8 sps:$4 sm:$0xff]  }
  0x9e   :  { %1833 = vmatpush1.bf16.msra.mxu0 %v2770_v31  ;;  %1711 = vmatprep.subr.bf16.mxu1 %v2771_v32  ;;  %v2852_v31 = vld [vmem:[#allocation5 + $0x450] ss:$8 sps:$4 sm:$0xff]   ;;  %v2857_v32 = vld [vmem:[#allocation5 + $0x164] ss:$8 sps:$4 sm:$0xff]   ;;  %v2875_v48 = vld [vmem:[#allocation5 + $0x194] ss:$8 sps:$4 sm:$0xff]  }
  0x9f   :  { %1834 = vmatprep.subr.bf16.mxu0 %v2773_v33  ;;  %v2860_v33 = vld [vmem:[#allocation5 + $0x464] ss:$8 sps:$4 sm:$0xff]   ;;  %v2873_v50 = vld [vmem:[#allocation5 + $0x190] ss:$8 sps:$4 sm:$0xff]   ;;  %v2903_v6 = vld [vmem:[#allocation5 + $0x1e0] ss:$8 sps:$4 sm:$0xff]  }
  0xa0   :  { %v2884_v53 = vld [vmem:[#allocation5 + $0x4a4] ss:$8 sps:$4 sm:$0xff]  }
  0xa1   :  { %1712 = vmatpush1.bf16.msra.mxu1 %v2775_v34  ;;  %v118_v34 = vld [vmem:[#allocation2 + $0x18] sm:$0xff]  ;;  %v2908_v5 = vld [vmem:[#allocation5 + $0x4e4] ss:$8 sps:$4 sm:$0xff]  }
  0xa2   :  { %1835 = vmatpush1.bf16.msra.mxu0 %v2776_v35  ;;  %1713 = vmatprep.subr.bf16.mxu1 %v2777_v36  ;;  %v2855_v35 = vld [vmem:[#allocation5 + $0x160] ss:$8 sps:$4 sm:$0xff]   ;;  %v134_v36 = vpack.c.bf16 %v118_v34, %v118_v34  ;;  %v2933_v34 = vld [vmem:[#allocation5 + $0x230] ss:$8 sps:$4 sm:$0xff]  }
  0xa3   :  { %1836 = vmatprep.subr.bf16.mxu0 %v2779_v37  ;;  %v2858_v37 = vld [vmem:[#allocation5 + $0x460] ss:$8 sps:$4 sm:$0xff]  }
  0xa5   :  { %1714 = vmatpush1.bf16.msra.mxu1 %v2781_v38  ;;  %v124_v38 = vld [vmem:[#allocation2 + $0x48] sm:$0xff] }
  0xa6   :  { %1837 = vmatpush1.bf16.msra.mxu0 %v2782_v39  ;;  %1715 = vmatprep.subr.bf16.mxu1 %v2783_v40  ;;  %v2863_v39 = vld [vmem:[#allocation5 + $0x174] ss:$8 sps:$4 sm:$0xff]  }
  0xa7   :  { %1838 = vmatprep.subr.bf16.mxu0 %v2785_v41  ;;  %v2866_v40 = vld [vmem:[#allocation5 + $0x474] ss:$8 sps:$4 sm:$0xff]   ;;  %v140_v41 = vpack.c.bf16 %v124_v38, %v124_v38  ;;  %v2939_v38 = vld [vmem:[#allocation5 + $0x240] ss:$8 sps:$4 sm:$0xff]  }
  0xa9   :  { %1716 = vmatpush1.bf16.msra.mxu1 %v2787_v42  ;;  %v2861_v42 = vld [vmem:[#allocation5 + $0x170] ss:$8 sps:$4 sm:$0xff]  }
  0xaa   :  { %1839 = vmatpush1.bf16.msra.mxu0 %v2788_v43  ;;  %1717 = vmatprep.subr.bf16.mxu1 %v2789_v44  ;;  %v2864_v43 = vld [vmem:[#allocation5 + $0x470] ss:$8 sps:$4 sm:$0xff]   ;;  %v2869_v44 = vld [vmem:[#allocation5 + $0x184] ss:$8 sps:$4 sm:$0xff]  }
  0xab   :  { %1840 = vmatprep.subr.bf16.mxu0 %v2791_v45  ;;  %v2872_v45 = vld [vmem:[#allocation5 + $0x484] ss:$8 sps:$4 sm:$0xff]  }
  0xad   :  { %1718 = vmatpush1.bf16.msra.mxu1 %v2793_v47  ;;  %v2870_v47 = vld [vmem:[#allocation5 + $0x480] ss:$8 sps:$4 sm:$0xff]  }
  0xae   :  { %1841 = vmatpush1.bf16.msra.mxu0 %v2794_v49  ;;  %1719 = vmatprep.subr.bf16.mxu1 %v2795_v51  ;;  %v2878_v49 = vld [vmem:[#allocation5 + $0x494] ss:$8 sps:$4 sm:$0xff]   ;;  %v2876_v51 = vld [vmem:[#allocation5 + $0x490] ss:$8 sps:$4 sm:$0xff]  }
  0xaf   :  { %1842 = vmatprep.subr.bf16.mxu0 %v2797_v52  ;;  %v2881_v52 = vld [vmem:[#allocation5 + $0x1a4] ss:$8 sps:$4 sm:$0xff]  }
  0xb1   :  { %1720 = vmatpush1.bf16.msra.mxu1 %v2799_v54  ;;  %v2879_v54 = vld [vmem:[#allocation5 + $0x1a0] ss:$8 sps:$4 sm:$0xff]  }
  0xb2   :  { %1843 = vmatpush1.bf16.msra.mxu0 %v2800_v55  ;;  %1721 = vmatprep.subr.bf16.mxu1 %v2801_v56  ;;  %v2882_v55 = vld [vmem:[#allocation5 + $0x4a0] ss:$8 sps:$4 sm:$0xff]   ;;  %v2887_v56 = vld [vmem:[#allocation5 + $0x1b4] ss:$8 sps:$4 sm:$0xff]  }
  0xb3   :  { %1844 = vmatprep.subr.bf16.mxu0 %v2803_v57  ;;  %v2890_v57 = vld [vmem:[#allocation5 + $0x4b4] ss:$8 sps:$4 sm:$0xff]  }
  0xb5   :  { %1722 = vmatpush1.bf16.msra.mxu1 %v2805_v58  ;;  %v2885_v58 = vld [vmem:[#allocation5 + $0x1b0] ss:$8 sps:$4 sm:$0xff]  }
  0xb6   :  { %1845 = vmatpush1.bf16.msra.mxu0 %v2806_v59  ;;  %1723 = vmatprep.subr.bf16.mxu1 %v2807_v60  ;;  %v2888_v59 = vld [vmem:[#allocation5 + $0x4b0] ss:$8 sps:$4 sm:$0xff]   ;;  %v2893_v60 = vld [vmem:[#allocation5 + $0x1c4] ss:$8 sps:$4 sm:$0xff]  }
  0xb7   :  { %1846 = vmatprep.subr.bf16.mxu0 %v2809_v61  ;;  %v2896_v61 = vld [vmem:[#allocation5 + $0x4c4] ss:$8 sps:$4 sm:$0xff]  }
  0xb9   :  { %1724 = vmatpush1.bf16.msra.mxu1 %v2811_v62  ;;  %v2891_v62 = vld [vmem:[#allocation5 + $0x1c0] ss:$8 sps:$4 sm:$0xff]  }
  0xba   :  { %1847 = vmatpush1.bf16.msra.mxu0 %v2812_v63  ;;  %1725 = vmatprep.subr.bf16.mxu1 %v2813_v0  ;;  %v2894_v63 = vld [vmem:[#allocation5 + $0x4c0] ss:$8 sps:$4 sm:$0xff]   ;;  %v2899_v0 = vld [vmem:[#allocation5 + $0x1d4] ss:$8 sps:$4 sm:$0xff]  }
  0xbb   :  { %1848 = vmatprep.subr.bf16.mxu0 %v2815_v1  ;;  %v2902_v1 = vld [vmem:[#allocation5 + $0x4d4] ss:$8 sps:$4 sm:$0xff]  }
  0xbd   :  { %1726 = vmatpush1.bf16.msra.mxu1 %v2817_v2  ;;  %v2897_v2 = vld [vmem:[#allocation5 + $0x1d0] ss:$8 sps:$4 sm:$0xff]  }
  0xbe   :  { %1849 = vmatpush1.bf16.msra.mxu0 %v2818_v3  ;;  %1736 = vmatprep.subr.bf16.mxu1 %v2821_v4  ;;  %v2900_v3 = vld [vmem:[#allocation5 + $0x4d0] ss:$8 sps:$4 sm:$0xff]   ;;  %v2905_v4 = vld [vmem:[#allocation5 + $0x1e4] ss:$8 sps:$4 sm:$0xff]  }
  0xbf   :  { %1859 = vmatprep.subr.bf16.mxu0 %v2824_v7  ;;  %v2906_v7 = vld [vmem:[#allocation5 + $0x4e0] ss:$8 sps:$4 sm:$0xff]  }
  0xc0   :  { %1728 = vmatmul.mubr.bf16.vlgmr.msra.gmra.mrb[0].mxu1 %v131_v10  ;;  %v2909_v10 = vld [vmem:[#allocation5 + $0x1f0] ss:$8 sps:$4 sm:$0xff]  }
  0xc1   :  { %1851 = vmatmul.mubr.bf16.vlgmr.msra.gmra.mrb[0].mxu0 %v137_v11  ;;  %1737 = vmatpush1.bf16.msra.mxu1 %v2819_v8  ;;  %v2911_v8 = vld [vmem:[#allocation5 + $0x1f4] ss:$8 sps:$4 sm:$0xff]   ;;  %v2912_v11 = vld [vmem:[#allocation5 + $0x4f0] ss:$8 sps:$4 sm:$0xff]  }
  0xc2   :  { %1860 = vmatpush1.bf16.msra.mxu0 %v2822_v9  ;;  %1738 = vmatprep.subr.bf16.mxu1 %v2827_v12  ;;  %v2914_v9 = vld [vmem:[#allocation5 + $0x4f4] ss:$8 sps:$4 sm:$0xff]   ;;  %v2917_v12 = vld [vmem:[#allocation5 + $0x204] ss:$8 sps:$4 sm:$0xff]  }
  0xc3   :  { %1861 = vmatprep.subr.bf16.mxu0 %v2830_v13  ;;  %1768 = vmatprep.mubr.bf16.mxu1 %v134_v36  ;;  %v117_v13 = vld [vmem:[#allocation2 + $0x10] sm:$0xff]  ;;  %v2941_v36 = vld [vmem:[#allocation5 + $0x244] ss:$8 sps:$4 sm:$0xff]  }
  0xc4   :  { %1891 = vmatprep.mubr.bf16.mxu0 %v140_v41  ;;  %v2950_v41 = vld [vmem:[#allocation5 + $0x554] ss:$8 sps:$4 sm:$0xff]  }
  0xc5   :  { %1739 = vmatpush1.bf16.msra.mxu1 %v2825_v14  ;;  %v123_v14 = vld [vmem:[#allocation2 + $0x40] sm:$0xff] }
  0xc6   :  { %1862 = vmatpush1.bf16.msra.mxu0 %v2828_v15  ;;  %1740 = vmatprep.subr.bf16.mxu1 %v2833_v16  ;;  %v2920_v15 = vld [vmem:[#allocation5 + $0x504] ss:$8 sps:$4 sm:$0xff]   ;;  %v2915_v16 = vld [vmem:[#allocation5 + $0x200] ss:$8 sps:$4 sm:$0xff]  }
  0xc7   :  { %1863 = vmatprep.subr.bf16.mxu0 %v2836_v17  ;;  %v2918_v17 = vld [vmem:[#allocation5 + $0x500] ss:$8 sps:$4 sm:$0xff]  }
  0xc9   :  { %1741 = vmatpush1.bf16.msra.mxu1 %v2831_v18  ;;  %v133_v18 = vpack.c.bf16 %v117_v13, %v117_v13  ;;  %v3004_v13 = vld [vmem:[#allocation5 + $0x5e4] ss:$8 sps:$4 sm:$0xff]  }
  0xca   :  { %1864 = vmatpush1.bf16.msra.mxu0 %v2834_v19  ;;  %1742 = vmatprep.subr.bf16.mxu1 %v2839_v20  ;;  %v139_v19 = vpack.c.bf16 %v123_v14, %v123_v14  ;;  %v2923_v20 = vld [vmem:[#allocation5 + $0x214] ss:$8 sps:$4 sm:$0xff]   ;;  %v2999_v14 = vld [vmem:[#allocation5 + $0x2e0] ss:$8 sps:$4 sm:$0xff]  }
  0xcb   :  { %1865 = vmatprep.subr.bf16.mxu0 %v2842_v21  ;;  %v2926_v21 = vld [vmem:[#allocation5 + $0x514] ss:$8 sps:$4 sm:$0xff]  }
  0xcd   :  { %1743 = vmatpush1.bf16.msra.mxu1 %v2837_v22  ;;  %v120_v22 = vld [vmem:[#allocation2 + $0x28] sm:$0xff] }
  0xce   :  { %1866 = vmatpush1.bf16.msra.mxu0 %v2840_v23  ;;  %1744 = vmatprep.subr.bf16.mxu1 %v2845_v24  ;;  %v2921_v23 = vld [vmem:[#allocation5 + $0x210] ss:$8 sps:$4 sm:$0xff]   ;;  %v136_v24 = vpack.c.bf16 %v120_v22, %v120_v22 }
  0xcf   :  { %1867 = vmatprep.subr.bf16.mxu0 %v2848_v25  ;;  %v126_v25 = vld [vmem:[#allocation2 + $0x58] sm:$0xff]  ;;  %v125_v22 = vld [vmem:[#allocation2 + $0x50] sm:$0xff] }
  0xd1   :  { %1745 = vmatpush1.bf16.msra.mxu1 %v2843_v26  ;;  %v2924_v26 = vld [vmem:[#allocation5 + $0x510] ss:$8 sps:$4 sm:$0xff]  }
  0xd2   :  { %1868 = vmatpush1.bf16.msra.mxu0 %v2846_v27  ;;  %1746 = vmatprep.subr.bf16.mxu1 %v2851_v28  ;;  %v2929_v27 = vld [vmem:[#allocation5 + $0x224] ss:$8 sps:$4 sm:$0xff]   ;;  %v142_v28 = vpack.c.bf16 %v126_v25, %v126_v25  ;;  %v141_v25 = vpack.c.bf16 %v125_v22, %v125_v22  ;;  %v3088_v22 = vld [vmem:[#allocation5 + $0x794] ss:$8 sps:$4 sm:$0xff]  }
  0xd3   :  { %1869 = vmatprep.subr.bf16.mxu0 %v2854_v29  ;;  %v2932_v29 = vld [vmem:[#allocation5 + $0x524] ss:$8 sps:$4 sm:$0xff]  }
  0xd5   :  { %1747 = vmatpush1.bf16.msra.mxu1 %v2849_v30  ;;  %v2927_v30 = vld [vmem:[#allocation5 + $0x220] ss:$8 sps:$4 sm:$0xff]  }
  0xd6   :  { %1870 = vmatpush1.bf16.msra.mxu0 %v2852_v31  ;;  %1748 = vmatprep.subr.bf16.mxu1 %v2857_v32  ;;  %v2930_v31 = vld [vmem:[#allocation5 + $0x520] ss:$8 sps:$4 sm:$0xff]   ;;  %v2935_v32 = vld [vmem:[#allocation5 + $0x234] ss:$8 sps:$4 sm:$0xff]  }
  0xd7   :  { %1871 = vmatprep.subr.bf16.mxu0 %v2860_v33  ;;  %v2938_v33 = vld [vmem:[#allocation5 + $0x534] ss:$8 sps:$4 sm:$0xff]  }
  0xd9   :  { %1749 = vmatpush1.bf16.msra.mxu1 %v2855_v35  ;;  %v2936_v35 = vld [vmem:[#allocation5 + $0x530] ss:$8 sps:$4 sm:$0xff]  }
  0xda   :  { %1872 = vmatpush1.bf16.msra.mxu0 %v2858_v37  ;;  %1750 = vmatprep.subr.bf16.mxu1 %v2863_v39  ;;  %v2944_v37 = vld [vmem:[#allocation5 + $0x544] ss:$8 sps:$4 sm:$0xff]   ;;  %v2942_v39 = vld [vmem:[#allocation5 + $0x540] ss:$8 sps:$4 sm:$0xff]  }
  0xdb   :  { %1873 = vmatprep.subr.bf16.mxu0 %v2866_v40  ;;  %v2947_v40 = vld [vmem:[#allocation5 + $0x254] ss:$8 sps:$4 sm:$0xff]  }
  0xdd   :  { %1751 = vmatpush1.bf16.msra.mxu1 %v2861_v42  ;;  %v2945_v42 = vld [vmem:[#allocation5 + $0x250] ss:$8 sps:$4 sm:$0xff]  }
  0xde   :  { %1874 = vmatpush1.bf16.msra.mxu0 %v2864_v43  ;;  %1752 = vmatprep.subr.bf16.mxu1 %v2869_v44  ;;  %v2948_v43 = vld [vmem:[#allocation5 + $0x550] ss:$8 sps:$4 sm:$0xff]   ;;  %v2953_v44 = vld [vmem:[#allocation5 + $0x264] ss:$8 sps:$4 sm:$0xff]  }
  0xdf   :  { %1875 = vmatprep.subr.bf16.mxu0 %v2872_v45  ;;  %v2956_v45 = vld [vmem:[#allocation5 + $0x564] ss:$8 sps:$4 sm:$0xff]  }
  0xe1   :  { %1753 = vmatpush1.bf16.msra.mxu1 %v2867_v46  ;;  %v2951_v46 = vld [vmem:[#allocation5 + $0x260] ss:$8 sps:$4 sm:$0xff]  }
  0xe2   :  { %1876 = vmatpush1.bf16.msra.mxu0 %v2870_v47  ;;  %1754 = vmatprep.subr.bf16.mxu1 %v2875_v48  ;;  %v2954_v47 = vld [vmem:[#allocation5 + $0x560] ss:$8 sps:$4 sm:$0xff]   ;;  %v2959_v48 = vld [vmem:[#allocation5 + $0x274] ss:$8 sps:$4 sm:$0xff]  }
  0xe3   :  { %1877 = vmatprep.subr.bf16.mxu0 %v2878_v49  ;;  %v2962_v49 = vld [vmem:[#allocation5 + $0x574] ss:$8 sps:$4 sm:$0xff]  }
  0xe5   :  { %1755 = vmatpush1.bf16.msra.mxu1 %v2873_v50  ;;  %v2957_v50 = vld [vmem:[#allocation5 + $0x270] ss:$8 sps:$4 sm:$0xff]  }
  0xe6   :  { %1878 = vmatpush1.bf16.msra.mxu0 %v2876_v51  ;;  %1756 = vmatprep.subr.bf16.mxu1 %v2881_v52  ;;  %v2960_v51 = vld [vmem:[#allocation5 + $0x570] ss:$8 sps:$4 sm:$0xff]   ;;  %v2965_v52 = vld [vmem:[#allocation5 + $0x284] ss:$8 sps:$4 sm:$0xff]  }
  0xe7   :  { %1879 = vmatprep.subr.bf16.mxu0 %v2884_v53  ;;  %v2968_v53 = vld [vmem:[#allocation5 + $0x584] ss:$8 sps:$4 sm:$0xff]  }
  0xe9   :  { %1757 = vmatpush1.bf16.msra.mxu1 %v2879_v54  ;;  %v2963_v54 = vld [vmem:[#allocation5 + $0x280] ss:$8 sps:$4 sm:$0xff]  }
  0xea   :  { %1880 = vmatpush1.bf16.msra.mxu0 %v2882_v55  ;;  %1758 = vmatprep.subr.bf16.mxu1 %v2887_v56  ;;  %v2966_v55 = vld [vmem:[#allocation5 + $0x580] ss:$8 sps:$4 sm:$0xff]   ;;  %v2971_v56 = vld [vmem:[#allocation5 + $0x294] ss:$8 sps:$4 sm:$0xff]  }
  0xeb   :  { %1881 = vmatprep.subr.bf16.mxu0 %v2890_v57  ;;  %v2974_v57 = vld [vmem:[#allocation5 + $0x594] ss:$8 sps:$4 sm:$0xff]  }
  0xed   :  { %1759 = vmatpush1.bf16.msra.mxu1 %v2885_v58  ;;  %v2969_v58 = vld [vmem:[#allocation5 + $0x290] ss:$8 sps:$4 sm:$0xff]  }
  0xee   :  { %1882 = vmatpush1.bf16.msra.mxu0 %v2888_v59  ;;  %1760 = vmatprep.subr.bf16.mxu1 %v2893_v60  ;;  %v2972_v59 = vld [vmem:[#allocation5 + $0x590] ss:$8 sps:$4 sm:$0xff]   ;;  %v2977_v60 = vld [vmem:[#allocation5 + $0x2a4] ss:$8 sps:$4 sm:$0xff]  }
  0xef   :  { %1883 = vmatprep.subr.bf16.mxu0 %v2896_v61  ;;  %v2980_v61 = vld [vmem:[#allocation5 + $0x5a4] ss:$8 sps:$4 sm:$0xff]  }
  0xf1   :  { %1761 = vmatpush1.bf16.msra.mxu1 %v2891_v62  ;;  %v2975_v62 = vld [vmem:[#allocation5 + $0x2a0] ss:$8 sps:$4 sm:$0xff]  }
  0xf2   :  { %1884 = vmatpush1.bf16.msra.mxu0 %v2894_v63  ;;  %1762 = vmatprep.subr.bf16.mxu1 %v2899_v0  ;;  %v2978_v63 = vld [vmem:[#allocation5 + $0x5a0] ss:$8 sps:$4 sm:$0xff]   ;;  %v2983_v0 = vld [vmem:[#allocation5 + $0x2b4] ss:$8 sps:$4 sm:$0xff]  }
  0xf3   :  { %1885 = vmatprep.subr.bf16.mxu0 %v2902_v1  ;;  %v2986_v1 = vld [vmem:[#allocation5 + $0x5b4] ss:$8 sps:$4 sm:$0xff]  }
  0xf5   :  { %1763 = vmatpush1.bf16.msra.mxu1 %v2897_v2  ;;  %v2981_v2 = vld [vmem:[#allocation5 + $0x2b0] ss:$8 sps:$4 sm:$0xff]  }
  0xf6   :  { %1886 = vmatpush1.bf16.msra.mxu0 %v2900_v3  ;;  %1764 = vmatprep.subr.bf16.mxu1 %v2905_v4  ;;  %v2984_v3 = vld [vmem:[#allocation5 + $0x5b0] ss:$8 sps:$4 sm:$0xff]   ;;  %v2989_v4 = vld [vmem:[#allocation5 + $0x2c4] ss:$8 sps:$4 sm:$0xff]  }
  0xf7   :  { %1887 = vmatprep.subr.bf16.mxu0 %v2908_v5  ;;  %v2992_v5 = vld [vmem:[#allocation5 + $0x5c4] ss:$8 sps:$4 sm:$0xff]  }
  0xf9   :  { %1765 = vmatpush1.bf16.msra.mxu1 %v2903_v6  ;;  %v2987_v6 = vld [vmem:[#allocation5 + $0x2c0] ss:$8 sps:$4 sm:$0xff]  }
  0xfa   :  { %1888 = vmatpush1.bf16.msra.mxu0 %v2906_v7  ;;  %1766 = vmatprep.subr.bf16.mxu1 %v2911_v8  ;;  %v2990_v7 = vld [vmem:[#allocation5 + $0x5c0] ss:$8 sps:$4 sm:$0xff]   ;;  %v2995_v8 = vld [vmem:[#allocation5 + $0x2d4] ss:$8 sps:$4 sm:$0xff]  }
  0xfb   :  { %1889 = vmatprep.subr.bf16.mxu0 %v2914_v9  ;;  %v2998_v9 = vld [vmem:[#allocation5 + $0x5d4] ss:$8 sps:$4 sm:$0xff]  }
  0xfd   :  { %1767 = vmatpush1.bf16.msra.mxu1 %v2909_v10  ;;  %v2993_v10 = vld [vmem:[#allocation5 + $0x2d0] ss:$8 sps:$4 sm:$0xff]  }
  0xfe   :  { %1890 = vmatpush1.bf16.msra.mxu0 %v2912_v11  ;;  %1777 = vmatprep.subr.bf16.mxu1 %v2917_v12  ;;  %v2996_v11 = vld [vmem:[#allocation5 + $0x5d0] ss:$8 sps:$4 sm:$0xff]   ;;  %v3001_v12 = vld [vmem:[#allocation5 + $0x2e4] ss:$8 sps:$4 sm:$0xff]  }
  0xff   :  { %1900 = vmatprep.subr.bf16.mxu0 %v2920_v15  ;;  %v3002_v15 = vld [vmem:[#allocation5 + $0x5e0] ss:$8 sps:$4 sm:$0xff]  }
 0x100   :  { %1769 = vmatmul.mubr.bf16.vlgmr.msra.gmra.mrb[0].mxu1 %v133_v18  ;;  %v3005_v18 = vld [vmem:[#allocation5 + $0x2f0] ss:$8 sps:$4 sm:$0xff]  }
 0x101   :  { %1892 = vmatmul.mubr.bf16.vlgmr.msra.gmra.mrb[0].mxu0 %v139_v19  ;;  %1778 = vmatpush1.bf16.msra.mxu1 %v2915_v16  ;;  %v3007_v16 = vld [vmem:[#allocation5 + $0x2f4] ss:$8 sps:$4 sm:$0xff]   ;;  %v3008_v19 = vld [vmem:[#allocation5 + $0x5f0] ss:$8 sps:$4 sm:$0xff]  }
 0x102   :  { %1901 = vmatpush1.bf16.msra.mxu0 %v2918_v17  ;;  %1779 = vmatprep.subr.bf16.mxu1 %v2923_v20  ;;  %v3010_v17 = vld [vmem:[#allocation5 + $0x5f4] ss:$8 sps:$4 sm:$0xff]   ;;  %v119_v20 = vld [vmem:[#allocation2 + $0x20] sm:$0xff] }
 0x103   :  { %1902 = vmatprep.subr.bf16.mxu0 %v2926_v21  ;;  %1809 = vmatprep.mubr.bf16.mxu1 %v136_v24  ;;  %v3013_v21 = vld [vmem:[#allocation5 + $0x604] ss:$8 sps:$4 sm:$0xff]   ;;  %v135_v24 = vpack.c.bf16 %v119_v20, %v119_v20  ;;  %v3083_v20 = vld [vmem:[#allocation5 + $0x780] ss:$8 sps:$4 sm:$0xff]  }
 0x104   :  { %1932 = vmatprep.mubr.bf16.mxu0 %v142_v28  ;;  %v3016_v28 = vld [vmem:[#allocation5 + $0x614] ss:$8 sps:$4 sm:$0xff]  }
 0x105   :  { %1780 = vmatpush1.bf16.msra.mxu1 %v2921_v23  ;;  %v128_v23 = vld [vmem:[#allocation2 + $0x68] sm:$0xff] }
 0x106   :  { %1903 = vmatpush1.bf16.msra.mxu0 %v2924_v26  ;;  %1781 = vmatprep.subr.bf16.mxu1 %v2929_v27  ;;  %v3011_v26 = vld [vmem:[#allocation5 + $0x600] ss:$8 sps:$4 sm:$0xff]   ;;  %v144_v27 = vpack.c.bf16 %v128_v23, %v128_v23 }
 0x107   :  { %1904 = vmatprep.subr.bf16.mxu0 %v2932_v29  ;;  %v3014_v29 = vld [vmem:[#allocation5 + $0x610] ss:$8 sps:$4 sm:$0xff]  }
 0x108   :  { %v3113_v23 = vld [vmem:[#allocation8 + $0x58] sm:$0xff]  }
 0x109   :  { %1782 = vmatpush1.bf16.msra.mxu1 %v2927_v30  ;;  %v3019_v30 = vld [vmem:[#allocation5 + $0x624] ss:$8 sps:$4 sm:$0xff]  }
 0x10a   :  { %1905 = vmatpush1.bf16.msra.mxu0 %v2930_v31  ;;  %1783 = vmatprep.subr.bf16.mxu1 %v2935_v32  ;;  %v3017_v31 = vld [vmem:[#allocation5 + $0x620] ss:$8 sps:$4 sm:$0xff]   ;;  %v3022_v32 = vld [vmem:[#allocation5 + $0x634] ss:$8 sps:$4 sm:$0xff]  }
 0x10b   :  { %1906 = vmatprep.subr.bf16.mxu0 %v2938_v33  ;;  %v3020_v33 = vld [vmem:[#allocation5 + $0x630] ss:$8 sps:$4 sm:$0xff]  }
 0x10d   :  { %1784 = vmatpush1.bf16.msra.mxu1 %v2933_v34  ;;  %v3025_v34 = vld [vmem:[#allocation5 + $0x644] ss:$8 sps:$4 sm:$0xff]  }
 0x10e   :  { %1907 = vmatpush1.bf16.msra.mxu0 %v2936_v35  ;;  %1785 = vmatprep.subr.bf16.mxu1 %v2941_v36  ;;  %v3023_v35 = vld [vmem:[#allocation5 + $0x640] ss:$8 sps:$4 sm:$0xff]   ;;  %v3028_v36 = vld [vmem:[#allocation5 + $0x654] ss:$8 sps:$4 sm:$0xff]  }
 0x10f   :  { %1908 = vmatprep.subr.bf16.mxu0 %v2944_v37  ;;  %v3026_v37 = vld [vmem:[#allocation5 + $0x650] ss:$8 sps:$4 sm:$0xff]  }
 0x111   :  { %1786 = vmatpush1.bf16.msra.mxu1 %v2939_v38  ;;  %v3031_v38 = vld [vmem:[#allocation5 + $0x664] ss:$8 sps:$4 sm:$0xff]  }
 0x112   :  { %1909 = vmatpush1.bf16.msra.mxu0 %v2942_v39  ;;  %1787 = vmatprep.subr.bf16.mxu1 %v2947_v40  ;;  %v3029_v39 = vld [vmem:[#allocation5 + $0x660] ss:$8 sps:$4 sm:$0xff]   ;;  %v3034_v40 = vld [vmem:[#allocation5 + $0x674] ss:$8 sps:$4 sm:$0xff]  }
 0x113   :  { %1910 = vmatprep.subr.bf16.mxu0 %v2950_v41  ;;  %v3032_v41 = vld [vmem:[#allocation5 + $0x670] ss:$8 sps:$4 sm:$0xff]  }
 0x115   :  { %1788 = vmatpush1.bf16.msra.mxu1 %v2945_v42  ;;  %v3037_v42 = vld [vmem:[#allocation5 + $0x684] ss:$8 sps:$4 sm:$0xff]  }
 0x116   :  { %1911 = vmatpush1.bf16.msra.mxu0 %v2948_v43  ;;  %1789 = vmatprep.subr.bf16.mxu1 %v2953_v44  ;;  %v3035_v43 = vld [vmem:[#allocation5 + $0x680] ss:$8 sps:$4 sm:$0xff]   ;;  %v3040_v44 = vld [vmem:[#allocation5 + $0x694] ss:$8 sps:$4 sm:$0xff]  }
 0x117   :  { %1912 = vmatprep.subr.bf16.mxu0 %v2956_v45  ;;  %v3038_v45 = vld [vmem:[#allocation5 + $0x690] ss:$8 sps:$4 sm:$0xff]  }
 0x119   :  { %1790 = vmatpush1.bf16.msra.mxu1 %v2951_v46  ;;  %v3043_v46 = vld [vmem:[#allocation5 + $0x6a4] ss:$8 sps:$4 sm:$0xff]  }
 0x11a   :  { %1913 = vmatpush1.bf16.msra.mxu0 %v2954_v47  ;;  %1791 = vmatprep.subr.bf16.mxu1 %v2959_v48  ;;  %v3041_v47 = vld [vmem:[#allocation5 + $0x6a0] ss:$8 sps:$4 sm:$0xff]   ;;  %v3046_v48 = vld [vmem:[#allocation5 + $0x6b4] ss:$8 sps:$4 sm:$0xff]  }
 0x11b   :  { %1914 = vmatprep.subr.bf16.mxu0 %v2962_v49  ;;  %v3044_v49 = vld [vmem:[#allocation5 + $0x6b0] ss:$8 sps:$4 sm:$0xff]  }
 0x11d   :  { %1792 = vmatpush1.bf16.msra.mxu1 %v2957_v50  ;;  %v3049_v50 = vld [vmem:[#allocation5 + $0x6c4] ss:$8 sps:$4 sm:$0xff]  }
 0x11e   :  { %1915 = vmatpush1.bf16.msra.mxu0 %v2960_v51  ;;  %1793 = vmatprep.subr.bf16.mxu1 %v2965_v52  ;;  %v3047_v51 = vld [vmem:[#allocation5 + $0x6c0] ss:$8 sps:$4 sm:$0xff]   ;;  %v3052_v52 = vld [vmem:[#allocation5 + $0x6d4] ss:$8 sps:$4 sm:$0xff]  }
 0x11f   :  { %1916 = vmatprep.subr.bf16.mxu0 %v2968_v53  ;;  %v3050_v53 = vld [vmem:[#allocation5 + $0x6d0] ss:$8 sps:$4 sm:$0xff]  }
 0x121   :  { %1794 = vmatpush1.bf16.msra.mxu1 %v2963_v54  ;;  %v3055_v54 = vld [vmem:[#allocation5 + $0x6e4] ss:$8 sps:$4 sm:$0xff]  }
 0x122   :  { %1917 = vmatpush1.bf16.msra.mxu0 %v2966_v55  ;;  %1795 = vmatprep.subr.bf16.mxu1 %v2971_v56  ;;  %v3053_v55 = vld [vmem:[#allocation5 + $0x6e0] ss:$8 sps:$4 sm:$0xff]   ;;  %v3058_v56 = vld [vmem:[#allocation5 + $0x6f4] ss:$8 sps:$4 sm:$0xff]  }
 0x123   :  { %1918 = vmatprep.subr.bf16.mxu0 %v2974_v57  ;;  %v3056_v57 = vld [vmem:[#allocation5 + $0x6f0] ss:$8 sps:$4 sm:$0xff]  }
 0x125   :  { %1796 = vmatpush1.bf16.msra.mxu1 %v2969_v58  ;;  %v127_v58 = vld [vmem:[#allocation2 + $0x60] sm:$0xff] }
 0x126   :  { %1919 = vmatpush1.bf16.msra.mxu0 %v2972_v59  ;;  %1797 = vmatprep.subr.bf16.mxu1 %v2977_v60  ;;  %v3061_v59 = vld [vmem:[#allocation5 + $0x704] ss:$8 sps:$4 sm:$0xff]   ;;  %v130_v60 = vld [vmem:[#allocation2 + $0x78] sm:$0xff] }
 0x127   :  { %1920 = vmatprep.subr.bf16.mxu0 %v2980_v61  ;;  %v143_v61 = vpack.c.bf16 %v127_v58, %v127_v58 }
 0x129   :  { %1798 = vmatpush1.bf16.msra.mxu1 %v2975_v62  ;;  %v3059_v62 = vld [vmem:[#allocation5 + $0x700] ss:$8 sps:$4 sm:$0xff]  }
 0x12a   :  { %1921 = vmatpush1.bf16.msra.mxu0 %v2978_v63  ;;  %1799 = vmatprep.subr.bf16.mxu1 %v2983_v0  ;;  %v146_v63 = vpack.c.bf16 %v130_v60, %v130_v60  ;;  %v3064_v0 = vld [vmem:[#allocation5 + $0x714] ss:$8 sps:$4 sm:$0xff]  }
 0x12b   :  { %1922 = vmatprep.subr.bf16.mxu0 %v2986_v1  ;;  %v3062_v1 = vld [vmem:[#allocation5 + $0x710] ss:$8 sps:$4 sm:$0xff]  }
 0x12d   :  { %1800 = vmatpush1.bf16.msra.mxu1 %v2981_v2  ;;  %v3067_v2 = vld [vmem:[#allocation5 + $0x724] ss:$8 sps:$4 sm:$0xff]  }
 0x12e   :  { %1923 = vmatpush1.bf16.msra.mxu0 %v2984_v3  ;;  %1801 = vmatprep.subr.bf16.mxu1 %v2989_v4  ;;  %v3065_v3 = vld [vmem:[#allocation5 + $0x720] ss:$8 sps:$4 sm:$0xff]   ;;  %v3070_v4 = vld [vmem:[#allocation5 + $0x734] ss:$8 sps:$4 sm:$0xff]  }
 0x12f   :  { %1924 = vmatprep.subr.bf16.mxu0 %v2992_v5  ;;  %v3068_v5 = vld [vmem:[#allocation5 + $0x730] ss:$8 sps:$4 sm:$0xff]  }
 0x131   :  { %1802 = vmatpush1.bf16.msra.mxu1 %v2987_v6  ;;  %v3073_v6 = vld [vmem:[#allocation5 + $0x744] ss:$8 sps:$4 sm:$0xff]  }
 0x132   :  { %1925 = vmatpush1.bf16.msra.mxu0 %v2990_v7  ;;  %1803 = vmatprep.subr.bf16.mxu1 %v2995_v8  ;;  %v3071_v7 = vld [vmem:[#allocation5 + $0x740] ss:$8 sps:$4 sm:$0xff]   ;;  %v3076_v8 = vld [vmem:[#allocation5 + $0x754] ss:$8 sps:$4 sm:$0xff]  }
 0x133   :  { %1926 = vmatprep.subr.bf16.mxu0 %v2998_v9  ;;  %v3074_v9 = vld [vmem:[#allocation5 + $0x750] ss:$8 sps:$4 sm:$0xff]  }
 0x135   :  { %1804 = vmatpush1.bf16.msra.mxu1 %v2993_v10  ;;  %v3079_v10 = vld [vmem:[#allocation5 + $0x764] ss:$8 sps:$4 sm:$0xff]  }
 0x136   :  { %1927 = vmatpush1.bf16.msra.mxu0 %v2996_v11  ;;  %1805 = vmatprep.subr.bf16.mxu1 %v3001_v12  ;;  %v3077_v11 = vld [vmem:[#allocation5 + $0x760] ss:$8 sps:$4 sm:$0xff]   ;;  %v3082_v12 = vld [vmem:[#allocation5 + $0x774] ss:$8 sps:$4 sm:$0xff]  }
 0x137   :  { %1928 = vmatprep.subr.bf16.mxu0 %v3004_v13  ;;  %v3107_v13 = vld [vmem:[#allocation8 + $0x40] sm:$0xff]  }
 0x139   :  { %1806 = vmatpush1.bf16.msra.mxu1 %v2999_v14  ;;  %v3108_v14 = vld [vmem:[#allocation8] sm:$0xff]  }
 0x13a   :  { %1929 = vmatpush1.bf16.msra.mxu0 %v3002_v15  ;;  %1807 = vmatprep.subr.bf16.mxu1 %v3007_v16  ;;  %v3109_v15 = vld [vmem:[#allocation8 + $0x48] sm:$0xff]  }
 0x13b   :  { %1930 = vmatprep.subr.bf16.mxu0 %v3010_v17  ;;  %v3080_v16 = vld [vmem:[#allocation5 + $0x770] ss:$8 sps:$4 sm:$0xff]  }
 0x13c   :  { %v3110_v17 = vld [vmem:[#allocation8 + $0x8] sm:$0xff]  }
 0x13d   :  { %1808 = vmatpush1.bf16.msra.mxu1 %v3005_v18  ;;  %v3085_v18 = vld [vmem:[#allocation5 + $0x784] ss:$8 sps:$4 sm:$0xff]  }
 0x13e   :  { %1931 = vmatpush1.bf16.msra.mxu0 %v3008_v19  ;;  %2630 = vmatprep.subr.bf16.mxu1 %v3107_v13  ;;  %v3111_v19 = vld [vmem:[#allocation8 + $0x50] sm:$0xff]  }
 0x13f   :  { %1941 = vmatprep.subr.bf16.mxu0 %v3013_v21  ;;  %v3112_v21 = vld [vmem:[#allocation8 + $0x10] sm:$0xff]  }
 0x140   :  { %1810 = vmatmul.mubr.bf16.vlgmr.msra.gmra.mrb[0].mxu1 %v135_v24  ;;  %v3086_v24 = vld [vmem:[#allocation5 + $0x790] ss:$8 sps:$4 sm:$0xff]  }
 0x141   :  { %1933 = vmatmul.mubr.bf16.vlgmr.msra.gmra.mrb[0].mxu0 %v141_v25  ;;  %2631 = vmatpush3.bf16.msra.mxu1 %v3108_v14  ;;  %v3114_v25 = vld [vmem:[#allocation8 + $0x18] sm:$0xff]   ;;  %v3128_v13 = vld [vmem:[#allocation11 + $0x28] sm:$0xff]  }
 0x142   :  { %1942 = vmatpush1.bf16.msra.mxu0 %v3011_v26  ;;  %1973 = vmatprep.mubr.bf16.mxu0 %v144_v27  ;;  %v3091_v26 = vld [vmem:[#allocation5 + $0x7a4] ss:$8 sps:$4 sm:$0xff]   ;;  %v3129_v14 = vld [vmem:[#allocation11 + $0x30] sm:$0xff]  }
 0x143   :  { %1943 = vmatprep.subr.bf16.mxu0 %v3016_v28  ;;  %2632 = vmatprep.subr.bf16.mxu1 %v3109_v15  ;;  %v3115_v27 = vld [vmem:[#allocation8 + $0x60] sm:$0xff]  }
 0x144   :  { %v3089_v28 = vld [vmem:[#allocation5 + $0x7a0] ss:$8 sps:$4 sm:$0xff]  }
 0x145   :  { %2633 = vmatpush3.bf16.msra.mxu1 %v3110_v17  ;;  %v3130_v15 = vld [vmem:[#allocation11 + $0x38] sm:$0xff]  }
 0x146   :  { %1944 = vmatpush1.bf16.msra.mxu0 %v3014_v29  ;;  %2634 = vmatprep.subr.bf16.mxu1 %v3111_v19  ;;  %v3116_v29 = vld [vmem:[#allocation8 + $0x20] sm:$0xff]  }
 0x147   :  { %1945 = vmatprep.subr.bf16.mxu0 %v3019_v30  ;;  %v3094_v30 = vld [vmem:[#allocation5 + $0x7b4] ss:$8 sps:$4 sm:$0xff]   ;;  %v2604_v17 = vld [vmem:[#allocation10] ss:$0 sm:$0xff] }
 0x149   :  { %2635 = vmatpush3.bf16.msra.mxu1 %v3112_v21 }
 0x14a   :  { %1946 = vmatpush1.bf16.msra.mxu0 %v3017_v31  ;;  %2636 = vmatprep.subr.bf16.mxu1 %v3113_v23  ;;  %v3117_v31 = vld [vmem:[#allocation8 + $0x68] sm:$0xff]  }
 0x14b   :  { %1947 = vmatprep.subr.bf16.mxu0 %v3022_v32  ;;  %v3092_v32 = vld [vmem:[#allocation5 + $0x7b0] ss:$8 sps:$4 sm:$0xff]  }
 0x14d   :  { %2637 = vmatpush3.bf16.msra.mxu1 %v3114_v25 }
 0x14e   :  { %1948 = vmatpush1.bf16.msra.mxu0 %v3020_v33  ;;  %2638 = vmatprep.subr.bf16.mxu1 %v3115_v27  ;;  %v3118_v33 = vld [vmem:[#allocation8 + $0x28] sm:$0xff]  }
 0x14f   :  { %1949 = vmatprep.subr.bf16.mxu0 %v3025_v34  ;;  %v3097_v34 = vld [vmem:[#allocation5 + $0x7c4] ss:$8 sps:$4 sm:$0xff]  }
 0x151   :  { %2639 = vmatpush3.bf16.msra.mxu1 %v3116_v29 }
 0x152   :  { %1950 = vmatpush1.bf16.msra.mxu0 %v3023_v35  ;;  %2640 = vmatprep.subr.bf16.mxu1 %v3117_v31  ;;  %v3095_v35 = vld [vmem:[#allocation5 + $0x7c0] ss:$8 sps:$4 sm:$0xff]  }
 0x153   :  { %1951 = vmatprep.subr.bf16.mxu0 %v3028_v36  ;;  %v3100_v36 = vld [vmem:[#allocation5 + $0x7d4] ss:$8 sps:$4 sm:$0xff]  }
 0x155   :  { %2641 = vmatpush3.bf16.msra.mxu1 %v3118_v33 }
 0x156   :  { %1952 = vmatpush1.bf16.msra.mxu0 %v3026_v37  ;;  %v3098_v37 = vld [vmem:[#allocation5 + $0x7d0] ss:$8 sps:$4 sm:$0xff]  }
 0x157   :  { %1953 = vmatprep.subr.bf16.mxu0 %v3031_v38  ;;  %v3103_v38 = vld [vmem:[#allocation5 + $0x7e4] ss:$8 sps:$4 sm:$0xff]  }
 0x15a   :  { %1954 = vmatpush1.bf16.msra.mxu0 %v3029_v39  ;;  %v3101_v39 = vld [vmem:[#allocation5 + $0x7e0] ss:$8 sps:$4 sm:$0xff]  }
 0x15b   :  { %1955 = vmatprep.subr.bf16.mxu0 %v3034_v40  ;;  %v3106_v40 = vld [vmem:[#allocation5 + $0x7f4] ss:$8 sps:$4 sm:$0xff]  }
 0x15e   :  { %1956 = vmatpush1.bf16.msra.mxu0 %v3032_v41  ;;  %v3104_v41 = vld [vmem:[#allocation5 + $0x7f0] ss:$8 sps:$4 sm:$0xff]  }
 0x15f   :  { %1957 = vmatprep.subr.bf16.mxu0 %v3037_v42  ;;  %v129_v42 = vld [vmem:[#allocation2 + $0x70] sm:$0xff] }
 0x162   :  { %1958 = vmatpush1.bf16.msra.mxu0 %v3035_v43  ;;  %v145_v43 = vpack.c.bf16 %v129_v42, %v129_v42 }
 0x163   :  { %1959 = vmatprep.subr.bf16.mxu0 %v3040_v44  ;;  %v3119_v44 = vld [vmem:[#allocation8 + $0x70] sm:$0xff]  }
 0x164   :  { %2642 = vmatprep.subr.bf16.mxu1 %v3119_v44 }
 0x166   :  { %1960 = vmatpush1.bf16.msra.mxu0 %v3038_v45 }
 0x167   :  { %1961 = vmatprep.subr.bf16.mxu0 %v3043_v46  ;;  %v3120_v46 = vld [vmem:[#allocation8 + $0x30] sm:$0xff]  }
 0x168   :  { %2643 = vmatpush3.bf16.msra.mxu1 %v3120_v46 }
 0x16a   :  { %1962 = vmatpush1.bf16.msra.mxu0 %v3041_v47 }
 0x16b   :  { %1963 = vmatprep.subr.bf16.mxu0 %v3046_v48 }
 0x16e   :  { %1964 = vmatpush1.bf16.msra.mxu0 %v3044_v49 }
 0x16f   :  { %1965 = vmatprep.subr.bf16.mxu0 %v3049_v50  ;;  %v3121_v50 = vld [vmem:[#allocation8 + $0x78] sm:$0xff]  }
 0x170   :  { %2644 = vmatprep.subr.bf16.mxu1 %v3121_v50 }
 0x172   :  { %1966 = vmatpush1.bf16.msra.mxu0 %v3047_v51  ;;  %v3122_v51 = vld [vmem:[#allocation8 + $0x38] sm:$0xff]  }
 0x173   :  { %1967 = vmatprep.subr.bf16.mxu0 %v3052_v52  ;;  %2645 = vmatpush3.bf16.msra.mxu1 %v3122_v51  ;;  %v3332_v52 = vmov 0.0  }
 0x174   :  { %2661 = vmatprep.subr.bf16.mxu1 %v3332_v52 }
 0x176   :  { %1968 = vmatpush1.bf16.msra.mxu0 %v3050_v53  ;;  %v405_v53 = vlaneseq }
 0x177   :  { %1969 = vmatprep.subr.bf16.mxu0 %v3055_v54 }
 0x178   :  { %v406_v54 = vshrl.u32 %v405_v53, 7  ;;  %v2316_v25 = vand.u32 127, %v405_v53 }
 0x17a   :  { %1970 = vmatpush1.bf16.msra.mxu0 %v3053_v55  ;;  %v407_v55 = vsub.s32 0, %v406_v54  ;;  %vm2317_vm1 = vcmp.lt.s32.totalorder %v2316_v25, 2 }
 0x17b   :  { %1971 = vmatprep.subr.bf16.mxu0 %v3058_v56  ;;  %v403_v56 = vld [vmem:[#allocation7] sm:$0x3] }
 0x17c   :  { %v408_v58 = vrot.slane %v403_v56, %v407_v55 }
 0x17e   :  { %1972 = vmatpush1.bf16.msra.mxu0 %v3056_v57  ;;  %v411_v57 = vsub.s32 1, %v406_v54 }
 0x17f   :  { %1982 = vmatprep.subr.bf16.mxu0 %v3061_v59 }
 0x180   :  { %v412_v59 = vrot.slane %v403_v56, %v411_v57 }
 0x181   :  { %1974 = vmatmul.mubr.bf16.vlgmr.msra.gmra.mrb[0].mxu0 %v143_v61 }
 0x182   :  { %1983 = vmatpush1.bf16.msra.mxu0 %v3059_v62  ;;  %2014 = vmatprep.mubr.bf16.mxu0 %v146_v63 }
 0x183   :  { %1984 = vmatprep.subr.bf16.mxu0 %v3064_v0 }
 0x186   :  { %1985 = vmatpush1.bf16.msra.mxu0 %v3062_v1 }
 0x187   :  { %1986 = vmatprep.subr.bf16.mxu0 %v3067_v2 }
 0x18a   :  { %1987 = vmatpush1.bf16.msra.mxu0 %v3065_v3 }
 0x18b   :  { %1988 = vmatprep.subr.bf16.mxu0 %v3070_v4 }
 0x18e   :  { %1989 = vmatpush1.bf16.msra.mxu0 %v3068_v5 }
 0x18f   :  { %1990 = vmatprep.subr.bf16.mxu0 %v3073_v6 }
 0x192   :  { %1991 = vmatpush1.bf16.msra.mxu0 %v3071_v7  ;;  %v3123_v7 = vld [vmem:[#allocation11] sm:$0xff]  }
 0x193   :  { %1992 = vmatprep.subr.bf16.mxu0 %v3076_v8 }
 0x196   :  { %1993 = vmatpush1.bf16.msra.mxu0 %v3074_v9  ;;  %v3124_v9 = vld [vmem:[#allocation11 + $0x8] sm:$0xff]  }
 0x197   :  { %1994 = vmatprep.subr.bf16.mxu0 %v3079_v10  ;;  %v3125_v10 = vld [vmem:[#allocation11 + $0x10] sm:$0xff]  }
 0x19a   :  { %1995 = vmatpush1.bf16.msra.mxu0 %v3077_v11  ;;  %v3126_v11 = vld [vmem:[#allocation11 + $0x18] sm:$0xff]  }
 0x19b   :  { %1996 = vmatprep.subr.bf16.mxu0 %v3082_v12  ;;  %v3127_v12 = vld [vmem:[#allocation11 + $0x20] sm:$0xff]  }
 0x19e   :  { %1997 = vmatpush1.bf16.msra.mxu0 %v3080_v16 }
 0x19f   :  { %1998 = vmatprep.subr.bf16.mxu0 %v3085_v18 }
 0x1a2   :  { %1999 = vmatpush1.bf16.msra.mxu0 %v3083_v20 }
 0x1a3   :  { %2000 = vmatprep.subr.bf16.mxu0 %v3088_v22 }
 0x1a6   :  { %2001 = vmatpush1.bf16.msra.mxu0 %v3086_v24 }
 0x1a7   :  { %2002 = vmatprep.subr.bf16.mxu0 %v3091_v26  ;;  %v2621_v26 = vld [vmem:[#allocation13] ss:$0 sm:$0xff] }
 0x1aa   :  { %2003 = vmatpush1.bf16.msra.mxu0 %v3089_v28 }
 0x1ab   :  { %2004 = vmatprep.subr.bf16.mxu0 %v3094_v30 }
 0x1ae   :  { %2005 = vmatpush1.bf16.msra.mxu0 %v3092_v32 }
 0x1af   :  { %2006 = vmatprep.subr.bf16.mxu0 %v3097_v34 }
 0x1b2   :  { %2007 = vmatpush1.bf16.msra.mxu0 %v3095_v35 }
 0x1b3   :  { %2008 = vmatprep.subr.bf16.mxu0 %v3100_v36 }
 0x1b6   :  { %2009 = vmatpush1.bf16.msra.mxu0 %v3098_v37 }
 0x1b7   :  { %2010 = vmatprep.subr.bf16.mxu0 %v3103_v38 }
 0x1ba   :  { %2011 = vmatpush1.bf16.msra.mxu0 %v3101_v39 }
 0x1bb   :  { %2012 = vmatprep.subr.bf16.mxu0 %v3106_v40 }
 0x1be   :  { %2013 = vmatpush1.bf16.msra.mxu0 %v3104_v41 }
 0x1c1   :  { %2015 = vmatmul.mubr.bf16.vlgmr.msra.gmra.mrb[0].mxu0 %v145_v43 }
 0x213   :  { %v1811_v45 = vpop.f32.mrb[0].mxu1 }
 0x214   :  { %v1813_v47 = vpop.f32.mrb[1].mxu1  ;;  %v2681_v60 = vadd.f32 %v1811_v45, %v408_v58 }
 0x215   :  { %v1815_v48 = vpop.f32.mrb[2].mxu1  ;;  %v2683_v61 = vadd.f32 %v1813_v47, %v412_v59 }
 0x216   :  { %v1816_v49 = vpop.f32.mrb[3].mxu1 }
 0x294   :  { %v2016_v62 = vpop.f32.mrb[0].mxu0 }
 0x295   :  { %v2682_v63 = vadd.f32 %v2681_v60, %v2016_v62  ;;  %v2018_v0 = vpop.f32.mrb[1].mxu0 }
 0x296   :  { %v2684_v1 = vadd.f32 %v2683_v61, %v2018_v0  ;;  %v2020_v2 = vpop.f32.mrb[2].mxu0 }
 0x297   :  { %v2023_v3 = vmax.f32 %v2682_v63, 0.0  ;;  %v2021_v4 = vpop.f32.mrb[3].mxu0 }
 0x298   :  { %v2024_v5 = vmax.f32 %v2684_v1, 0.0 }
 0x299   :  { %v2025_v8 = vpack.c.bf16 %v2023_v3, %v2023_v3 }
 0x29a   :  { %v2026_v6 = vpack.c.bf16 %v2024_v5, %v2024_v5 }
 0x29c   :  { %2194 = vmatprep.mubr.bf16.mxu1 %v2026_v6 }
 0x29d   :  { %2195 = vmatmul.mubr.bf16.vlgmr.msra.gmra.mrb[4].mxu1 %v2025_v8 }
 0x29e   :  { %2662 = vmatpush3.bf16.msra.mxu1 %v3123_v7  ;;  %2677 = vmatprep.mubr.msk.bf16.mxu1 %vm3333_vm0, %v3332_v52 }
 0x29f   :  { %2663 = vmatprep.subr.bf16.mxu1 %v3332_v52 }
 0x2a2   :  { %2664 = vmatpush3.bf16.msra.mxu1 %v3124_v9 }
 0x2a3   :  { %2665 = vmatprep.subr.bf16.mxu1 %v3332_v52 }
 0x2a6   :  { %2666 = vmatpush3.bf16.msra.mxu1 %v3125_v10 }
 0x2a7   :  { %2667 = vmatprep.subr.bf16.mxu1 %v3332_v52 }
 0x2aa   :  { %2668 = vmatpush3.bf16.msra.mxu1 %v3126_v11 }
 0x2ab   :  { %2669 = vmatprep.subr.bf16.mxu1 %v3332_v52 }
 0x2ae   :  { %2670 = vmatpush3.bf16.msra.mxu1 %v3127_v12 }
 0x2af   :  { %2671 = vmatprep.subr.bf16.mxu1 %v3332_v52 }
 0x2b2   :  { %2672 = vmatpush3.bf16.msra.mxu1 %v3128_v13 }
 0x2b3   :  { %2673 = vmatprep.subr.bf16.mxu1 %v3332_v52 }
 0x2b6   :  { %2674 = vmatpush3.bf16.msra.mxu1 %v3129_v14 }
 0x2b7   :  { %2675 = vmatprep.subr.bf16.mxu1 %v3332_v52 }
 0x2ba   :  { %2676 = vmatpush3.bf16.msra.mxu1 %v3130_v15 }
 0x370   :  { %v2646_v16 = vpop.f32.mrb[4].mxu1 }
 0x371   :  { %v2647_v18 = vpop.f32.mrb[5].mxu1 }
 0x372   :  { %v2648_v19 = vadd.f32 %v2647_v18, %v2646_v16  ;;  %v2649_v20 = vpop.f32.mrb[6].mxu1 }
 0x373   :  { %v2650_v21 = vpop.f32.mrb[7].mxu1 }
 0x374   :  { %v2197_v22 = vadd.f32 %v2648_v19, %v2604_v17 }
 0x376   :  { %v2202_v23 = vmax.f32 %v2197_v22, 0.0 }
 0x378   :  { %v2203_v24 = vpack.c.bf16 %v2202_v23, %v2202_v23 }
 0x37a   :  { %2678 = vmatmul.mubr.bf16.vlgmr.msra.gmra.mrb[8].mxu1 %v2203_v24 }
 0x44d   :  { %v2309_v27 = vpop.f32.mrb[8].mxu1 }
 0x44e   :  { %v2310_v28 = vadd.f32 %v2621_v26, %v2309_v27  ;;  %v2679_v29 = vpop.f32.mrb[9].mxu1 }
 0x44f   :  { %v2312_v30 = vpop.f32.mrb[10].mxu1 }
 0x450   :  { %v2680_v31 = vpop.f32.mrb[11].mxu1  ;;  %v2318_v32 = vsel %vm2317_vm1, %v2310_v28, -1e+30 }
 0x451   :  { %2319 = vmax.xlane.f32.xlu0 %v2318_v32 }
 0x4de   :  { %v2320_v33 = vpop.xlane.xlu0 %2319 }
 0x4df   :  { %v2321_v34 = vsub.f32 %v2318_v32, %v2320_v33 }
 0x4e1   :  { %v2322_v35 = vmul.f32 1.442695, %v2321_v34 }
 0x4e3   :  { %3131 = vpow2.f32 %v2322_v35 }
 0x4ed   :  { %v3132_v36 = vpop.eup %3131 }
 0x4ee   :  { %2324 = vadd.xlane.f32.xlu0 %v3132_v36 }
 0x57b   :  { %v2325_v37 = vpop.xlane.xlu0 %2324 }
 0x57c   :  { %3133 = vrcp.f32 %v2325_v37 }
 0x586   :  { %v3134_v38 = vpop.eup %3133 }
 0x587   :  { %v2327_v39 = vmul.f32 %v3134_v38, %v3132_v36 }
 0x589   :  { %v2328_v40 = vpack.c.bf16 %v2327_v39, %v2327_v39 }
 0x58b   :  { %2329 = vst [vmem:[#allocation14] sm:$0xf] %v2328_v40 }
 0x58c   :  { %3300 = shalt.err (!%p3297_p4)
}
 0x58d   :  { %s3301_s15 = scalar_lea.hbm %s3478_s7, 64 }
 0x58e   :  { %p3302_p5 = scmp.ne.s32.totalorder %s3478_s7, %s3301_s15  ;;  %p3305_p6 = scmp.lt.u32.totalorder %s3301_s15, %s3478_s7 }
 0x590   :  { %p3307_p7 = pnand %p3305_p6, %p3302_p5 }
 0x592   :  { %3310 = shalt.err (!%p3307_p7)
}
 0x593   :  { %2339 = dma.vmem_to_hbm [thread:$0]  %s2337_s13, 64, %s3478_s7, [#allocation4]  }
 0x594   :  { %3319 = dma.done.wait [#allocation4], 64  }
 0x595   :  { %3320 = vsyncadd [#allocation4], 4294967232 }
 0x596   :  { %2343 = vsyncpa [#allocation3], 1 }
 0x597   :  { %2344 = vsyncpa [#allocation6], 1 }
 0x598   :  { %2345 = vsyncpa [#allocation9], 1 }
 0x599   :  { %2346 = vsyncpa [#allocation12], 1 }
 0x59a   :  { %2347 = vsyncpa [#allocation4], 1 }

</bundles_post_ra>
